<compile_context>
chip_gen: v7x
topology: tpu7x:2x2x1
jax: 0.10.0
libtpu: 0.0.40
codegen_flags: <defaults>
</compile_context>

<pallas_src>
import functools

import jax
import jax.numpy as jnp
import numpy as np
from jax import lax
from jax.experimental import pallas as pl
from jax.experimental.pallas import tpu as pltpu


def _transformer_layer_kernel(
    x_ref,                                  # (L, C) one batch element, f32
    wq_ref, wk_ref, wv_ref,                 # (C, C) bf16, fused q/k/v + in_proj
    wo_ref, wmlp_ref,                       # (C, C) bf16, out_proj / fused fc1*fc2
    bq_ref, bk_ref, bv_ref, bo_ref,         # (1, C) f32 biases
    o_ref,                                  # (L, C)
    *, num_heads,
):
    f32 = jnp.float32
    bf16 = jnp.bfloat16

    x = x_ref[...].astype(f32)              # residual path stays f32
    x_bf = x.astype(bf16)                   # MXU operand
    C = x.shape[-1]
    D = C // num_heads

    # Fused (outer q/k/v -> MHA in_proj) projections.  1/sqrt(D) is already
    # folded into wq/bq on the host.
    qp = jnp.dot(x_bf, wq_ref[...], preferred_element_type=f32) + bq_ref[...]
    kp = jnp.dot(x_bf, wk_ref[...], preferred_element_type=f32) + bk_ref[...]
    vp = jnp.dot(x_bf, wv_ref[...], preferred_element_type=f32) + bv_ref[...]

    # First residual + out-proj bias; per-head out-proj accumulated below.
    x1 = x + bo_ref[...]

    # TODO(synk): flash-style KV tiling with an online softmax for long L.
    for h in range(num_heads):
        lo = h * D
        qh = qp[:, lo:lo + D].astype(bf16)
        kh = kp[:, lo:lo + D].astype(bf16)
        vh = vp[:, lo:lo + D].astype(bf16)

        # s = qh @ kh.T without an explicit in-kernel transpose.
        s = lax.dot_general(qh, kh, (((1,), (1,)), ((), ())),
                            preferred_element_type=f32)           # (L, L)
        s = s - jnp.max(s, axis=-1, keepdims=True)
        e = jnp.exp(s)
        p = e * pl.reciprocal(jnp.sum(e, axis=-1, keepdims=True), approx=True)

        oh = jnp.dot(p.astype(bf16), vh, preferred_element_type=f32)  # (L, D)
        # attn @ Wo == sum_h oh @ Wo[hD:(h+1)D, :]  -> no concatenate.
        x1 = x1 + jnp.dot(oh.astype(bf16), wo_ref[lo:lo + D, :],
                          preferred_element_type=f32)

    # Feed-forward: fc2(fc1(x1)) is purely linear in the reference module, so
    # fc1*fc2 was pre-fused into a single (C, C) matrix on the host.
    y = jnp.dot(x1.astype(bf16), wmlp_ref[...], preferred_element_type=f32) + x1
    o_ref[...] = y.astype(o_ref.dtype)


def prepare_params(params, num_heads):
    """One-time host-side weight prep: fuse, fold scale, transpose, cast bf16."""
    C = params["q_w"].shape[0]
    assert C % num_heads == 0
    D = C // num_heads
    scale = float(D) ** -0.5

    wi = params["in_proj_w"]                 # (3C, C)
    bi = params["in_proj_b"]                 # (3C,)

    # y = x @ Wq^T @ Wiq^T + biq  ==  x @ (Wq^T Wiq^T) + biq   (same for k, v)
    wq_eff = (params["q_w"].T @ wi[:C].T) * scale          # scale folded in
    wk_eff = params["k_w"].T @ wi[C:2 * C].T
    wv_eff = params["v_w"].T @ wi[2 * C:].T
    wo_t = params["out_w"].T
    wmlp_t = params["fc1_w"].T @ params["fc2_w"].T          # fused linear MLP

    bq = (bi[:C] * scale).reshape(1, C)
    bk = bi[C:2 * C].reshape(1, C)
    bv = bi[2 * C:].reshape(1, C)
    bo = params["out_b"].reshape(1, C)

    bf16, f32 = jnp.bfloat16, jnp.float32
    return (wq_eff.astype(bf16), wk_eff.astype(bf16), wv_eff.astype(bf16),
            wo_t.astype(bf16), wmlp_t.astype(bf16),
            bq.astype(f32), bk.astype(f32), bv.astype(f32), bo.astype(f32))


def _vmem_limit_bytes(L, C, num_heads):
    bf16, f32 = 2, 4
    weights = 5 * C * C * bf16                       # resident, single-buffered
    biases = 4 * 8 * max(C, 128) * f32               # (1, C) padded tiles
    io = 2 * 2 * L * C * f32                         # x / out double buffers
    interm = 12 * L * C * f32 + 4 * L * L * f32      # activations + scores
    est = 2 * (weights + biases + io + interm)       # 2x safety margin
    # Raise the default scoped limit, but stay under v7x's 64 MiB physical VMEM.
    return int(min(max(est, 32 * 1024 * 1024), 56 * 1024 * 1024))


def _make_call(B, L, C, num_heads, out_dtype, *, single_buffer_weights):
    # Constant index_map -> weights are DMA'd once and stay resident across
    # the batch grid; Buffered(1) drops the (pointless) second buffer.
    w_kwargs = {"pipeline_mode": pl.Buffered(1)} if single_buffer_weights else {}
    wspec = pl.BlockSpec((C, C), lambda b: (0, 0), **w_kwargs)
    bspec = pl.BlockSpec((1, C), lambda b: (0, 0), **w_kwargs)
    x_spec = pl.BlockSpec((None, L, C), lambda b: (b, 0, 0))
    o_spec = pl.BlockSpec((None, L, C), lambda b: (b, 0, 0))

    return pl.pallas_call(
        functools.partial(_transformer_layer_kernel, num_heads=num_heads),
        out_shape=jax.ShapeDtypeStruct((B, L, C), out_dtype),
        grid=(B,),
        in_specs=[x_spec,
                  wspec, wspec, wspec, wspec, wspec,
                  bspec, bspec, bspec, bspec],
        out_specs=o_spec,
        compiler_params=pltpu.CompilerParams(
            dimension_semantics=("parallel",),
            vmem_limit_bytes=_vmem_limit_bytes(L, C, num_heads),
        ),
    )


def transformer_layer(x, prepared, num_heads):
    """x: (L, B, C) - the PyTorch nn.MultiheadAttention default layout."""
    L, B, C = x.shape
    assert C % num_heads == 0

    # Boundary layout glue: per-batch contiguous (L, C) slabs for aligned blocks.
    xb = jnp.transpose(x, (1, 0, 2))                            # (B, L, C)

    try:
        out = _make_call(B, L, C, num_heads, x.dtype,
                         single_buffer_weights=True)(xb, *prepared)
    except Exception:
        # Fallback for JAX versions without Buffered(1) single-buffering.
        out = _make_call(B, L, C, num_heads, x.dtype,
                         single_buffer_weights=False)(xb, *prepared)

    return jnp.transpose(out, (1, 0, 2))                        # back to (L, B, C)


def _transformer_layer_reference(x, params, num_heads):
    """Pure-JAX mirror of the (unfused, f32) PyTorch forward, for verification."""
    L, B, C = x.shape
    D = C // num_heads
    q = x @ params["q_w"].T
    k = x @ params["k_w"].T
    v = x @ params["v_w"].T
    wi, bi = params["in_proj_w"], params["in_proj_b"]
    qp = q @ wi[:C].T + bi[:C]
    kp = k @ wi[C:2 * C].T + bi[C:2 * C]
    vp = v @ wi[2 * C:].T + bi[2 * C:]

    def split_heads(t):                                         # (L,B,C)->(B,H,L,D)
        return jnp.transpose(t.reshape(L, B, num_heads, D), (1, 2, 0, 3))

    qh, kh, vh = split_heads(qp), split_heads(kp), split_heads(vp)
    s = jnp.einsum("bhld,bhmd->bhlm", qh * (float(D) ** -0.5), kh)
    p = jax.nn.softmax(s, axis=-1)
    o = jnp.einsum("bhlm,bhmd->bhld", p, vh)                    # (B,H,L,D)
    o = jnp.transpose(o, (2, 0, 1, 3)).reshape(L, B, C)
    attn_out = o @ params["out_w"].T + params["out_b"]
    x1 = attn_out + x
    return (x1 @ params["fc1_w"].T) @ params["fc2_w"].T + x1


if __name__ == "__main__":
    key = jax.random.PRNGKey(0)
    # Small but lane-aligned shapes (C multiple of 128, L multiple of 8).
    L, B, C, H = 16, 2, 128, 4
    ks = jax.random.split(key, 10)
    sc = float(C) ** -0.5
    params = {
        "q_w": jax.random.normal(ks[0], (C, C), jnp.float32) * sc,
        "k_w": jax.random.normal(ks[1], (C, C), jnp.float32) * sc,
        "v_w": jax.random.normal(ks[2], (C, C), jnp.float32) * sc,
        "in_proj_w": jax.random.normal(ks[3], (3 * C, C), jnp.float32) * sc,
        "in_proj_b": jax.random.normal(ks[4], (3 * C,), jnp.float32) * 0.1,
        "out_w": jax.random.normal(ks[5], (C, C), jnp.float32) * sc,
        "out_b": jax.random.normal(ks[6], (C,), jnp.float32) * 0.1,
        "fc1_w": jax.random.normal(ks[7], (C, C), jnp.float32) * sc,
        "fc2_w": jax.random.normal(ks[8], (C, C), jnp.float32) * sc,
    }
    x = jax.random.normal(ks[9], (L, B, C), jnp.float32)

    prepared = prepare_params(params, num_heads=H)               # one-time prep
    y = transformer_layer(x, prepared, num_heads=H)
    y = jax.block_until_ready(y)

    y_ref = _transformer_layer_reference(x, params, num_heads=H)
    assert y.shape == (L, B, C), y.shape
    # bf16 MXU operands + approx reciprocal (per perf review) -> loosened tol.
    np.testing.assert_allclose(np.asarray(y), np.asarray(y_ref),
                               rtol=5e-2, atol=5e-2)
    print("KERNEL_OK")
</pallas_src>

<mosaic_0001>
module attributes {stable_mosaic.version = 11 : i64} {
  func.func @_transformer_layer_kernel(%arg0: i32, %arg1: memref<1x16x128xf32, #tpu.memory_space<vmem>>, %arg2: memref<128x128xbf16, #tpu.memory_space<vmem>>, %arg3: memref<128x128xbf16, #tpu.memory_space<vmem>>, %arg4: memref<128x128xbf16, #tpu.memory_space<vmem>>, %arg5: memref<128x128xbf16, #tpu.memory_space<vmem>>, %arg6: memref<128x128xbf16, #tpu.memory_space<vmem>>, %arg7: memref<1x128xf32, #tpu.memory_space<vmem>>, %arg8: memref<1x128xf32, #tpu.memory_space<vmem>>, %arg9: memref<1x128xf32, #tpu.memory_space<vmem>>, %arg10: memref<1x128xf32, #tpu.memory_space<vmem>>, %arg11: memref<1x16x128xf32, #tpu.memory_space<vmem>>) attributes {dimension_semantics = [#tpu.dimension_semantics<parallel>], iteration_bounds = array<i64: 2>, scalar_prefetch = 0 : i64, scratch_operands = 0 : i64, tpu.core_type = #tpu.core_type<tc>, window_params = [{transform_indices = @transform_0, window_bounds = array<i64: 1, 16, 128>}, {pipeline_mode = #tpu.pipeline_mode<synchronous>, transform_indices = @transform_1, window_bounds = array<i64: 128, 128>}, {pipeline_mode = #tpu.pipeline_mode<synchronous>, transform_indices = @transform_2, window_bounds = array<i64: 128, 128>}, {pipeline_mode = #tpu.pipeline_mode<synchronous>, transform_indices = @transform_3, window_bounds = array<i64: 128, 128>}, {pipeline_mode = #tpu.pipeline_mode<synchronous>, transform_indices = @transform_4, window_bounds = array<i64: 128, 128>}, {pipeline_mode = #tpu.pipeline_mode<synchronous>, transform_indices = @transform_5, window_bounds = array<i64: 128, 128>}, {pipeline_mode = #tpu.pipeline_mode<synchronous>, transform_indices = @transform_6, window_bounds = array<i64: 1, 128>}, {pipeline_mode = #tpu.pipeline_mode<synchronous>, transform_indices = @transform_7, window_bounds = array<i64: 1, 128>}, {pipeline_mode = #tpu.pipeline_mode<synchronous>, transform_indices = @transform_8, window_bounds = array<i64: 1, 128>}, {pipeline_mode = #tpu.pipeline_mode<synchronous>, transform_indices = @transform_9, window_bounds = array<i64: 1, 128>}, {transform_indices = @transform_10, window_bounds = array<i64: 1, 16, 128>}]} {
    %c0 = arith.constant 0 : index
    %c0_0 = arith.constant 0 : index
    %c0_1 = arith.constant 0 : index
    %0 = vector.load %arg1[%c0, %c0_0, %c0_1] : memref<1x16x128xf32, #tpu.memory_space<vmem>>, vector<1x16x128xf32>
    %1 = vector.shape_cast %0 : vector<1x16x128xf32> to vector<16x128xf32>
    %2 = arith.truncf %1 : vector<16x128xf32> to vector<16x128xbf16>
    %c0_2 = arith.constant 0 : index
    %c0_3 = arith.constant 0 : index
    %3 = vector.load %arg2[%c0_2, %c0_3] : memref<128x128xbf16, #tpu.memory_space<vmem>>, vector<128x128xbf16>
    %cst = arith.constant dense<0.000000e+00> : vector<16x128xf32>
    %4 = tpu.matmul %2, %3, %cst {dimension_numbers = #tpu.dot_dimension_numbers<[1], [0], [0], [1], [0, 0, 1, 1], [], []>} : vector<16x128xbf16>, vector<128x128xbf16>, vector<16x128xf32> -> vector<16x128xf32>
    %c0_4 = arith.constant 0 : index
    %c0_5 = arith.constant 0 : index
    %5 = vector.load %arg7[%c0_4, %c0_5] : memref<1x128xf32, #tpu.memory_space<vmem>>, vector<1x128xf32>
    %6 = vector.broadcast %5 : vector<1x128xf32> to vector<16x128xf32>
    %7 = arith.addf %4, %6 : vector<16x128xf32>
    %c0_6 = arith.constant 0 : index
    %c0_7 = arith.constant 0 : index
    %8 = vector.load %arg3[%c0_6, %c0_7] : memref<128x128xbf16, #tpu.memory_space<vmem>>, vector<128x128xbf16>
    %cst_8 = arith.constant dense<0.000000e+00> : vector<16x128xf32>
    %9 = tpu.matmul %2, %8, %cst_8 {dimension_numbers = #tpu.dot_dimension_numbers<[1], [0], [0], [1], [0, 0, 1, 1], [], []>} : vector<16x128xbf16>, vector<128x128xbf16>, vector<16x128xf32> -> vector<16x128xf32>
    %c0_9 = arith.constant 0 : index
    %c0_10 = arith.constant 0 : index
    %10 = vector.load %arg8[%c0_9, %c0_10] : memref<1x128xf32, #tpu.memory_space<vmem>>, vector<1x128xf32>
    %11 = vector.broadcast %10 : vector<1x128xf32> to vector<16x128xf32>
    %12 = arith.addf %9, %11 : vector<16x128xf32>
    %c0_11 = arith.constant 0 : index
    %c0_12 = arith.constant 0 : index
    %13 = vector.load %arg4[%c0_11, %c0_12] : memref<128x128xbf16, #tpu.memory_space<vmem>>, vector<128x128xbf16>
    %cst_13 = arith.constant dense<0.000000e+00> : vector<16x128xf32>
    %14 = tpu.matmul %2, %13, %cst_13 {dimension_numbers = #tpu.dot_dimension_numbers<[1], [0], [0], [1], [0, 0, 1, 1], [], []>} : vector<16x128xbf16>, vector<128x128xbf16>, vector<16x128xf32> -> vector<16x128xf32>
    %c0_14 = arith.constant 0 : index
    %c0_15 = arith.constant 0 : index
    %15 = vector.load %arg9[%c0_14, %c0_15] : memref<1x128xf32, #tpu.memory_space<vmem>>, vector<1x128xf32>
    %16 = vector.broadcast %15 : vector<1x128xf32> to vector<16x128xf32>
    %17 = arith.addf %14, %16 : vector<16x128xf32>
    %c0_16 = arith.constant 0 : index
    %c0_17 = arith.constant 0 : index
    %18 = vector.load %arg10[%c0_16, %c0_17] : memref<1x128xf32, #tpu.memory_space<vmem>>, vector<1x128xf32>
    %19 = vector.broadcast %18 : vector<1x128xf32> to vector<16x128xf32>
    %20 = arith.addf %1, %19 : vector<16x128xf32>
    %21 = vector.extract_strided_slice %7 {offsets = [0, 0], sizes = [16, 32], strides = [1, 1]} : vector<16x128xf32> to vector<16x32xf32>
    %22 = arith.truncf %21 : vector<16x32xf32> to vector<16x32xbf16>
    %23 = vector.extract_strided_slice %12 {offsets = [0, 0], sizes = [16, 32], strides = [1, 1]} : vector<16x128xf32> to vector<16x32xf32>
    %24 = arith.truncf %23 : vector<16x32xf32> to vector<16x32xbf16>
    %25 = vector.extract_strided_slice %17 {offsets = [0, 0], sizes = [16, 32], strides = [1, 1]} : vector<16x128xf32> to vector<16x32xf32>
    %26 = arith.truncf %25 : vector<16x32xf32> to vector<16x32xbf16>
    %cst_18 = arith.constant dense<0.000000e+00> : vector<16x16xf32>
    %27 = tpu.matmul %22, %24, %cst_18 {dimension_numbers = #tpu.dot_dimension_numbers<[1], [1], [0], [0], [0, 0, 1, 0], [], []>} : vector<16x32xbf16>, vector<16x32xbf16>, vector<16x16xf32> -> vector<16x16xf32>
    %cst_19 = arith.constant dense<0xFF800000> : vector<16xf32>
    %28 = vector.multi_reduction <maximumf>, %27, %cst_19 [1] : vector<16x16xf32> to vector<16xf32>
    %29 = vector.shape_cast %28 : vector<16xf32> to vector<16x1xf32>
    %30 = vector.broadcast %29 : vector<16x1xf32> to vector<16x16xf32>
    %31 = arith.subf %27, %30 : vector<16x16xf32>
    %32 = math.exp %31 : vector<16x16xf32>
    %cst_20 = arith.constant dense<0.000000e+00> : vector<16xf32>
    %33 = vector.multi_reduction <add>, %32, %cst_20 [1] : vector<16x16xf32> to vector<16xf32>
    %34 = vector.shape_cast %33 : vector<16xf32> to vector<16x1xf32>
    %35 = tpu.reciprocal %34 {approx = true} : vector<16x1xf32> -> vector<16x1xf32>
    %36 = vector.broadcast %35 : vector<16x1xf32> to vector<16x16xf32>
    %37 = arith.mulf %32, %36 : vector<16x16xf32>
    %38 = arith.truncf %37 : vector<16x16xf32> to vector<16x16xbf16>
    %cst_21 = arith.constant dense<0.000000e+00> : vector<16x32xf32>
    %39 = tpu.matmul %38, %26, %cst_21 {dimension_numbers = #tpu.dot_dimension_numbers<[1], [0], [0], [1], [0, 0, 1, 1], [], []>} : vector<16x16xbf16>, vector<16x32xbf16>, vector<16x32xf32> -> vector<16x32xf32>
    %40 = arith.truncf %39 : vector<16x32xf32> to vector<16x32xbf16>
    %c0_22 = arith.constant 0 : index
    %c0_23 = arith.constant 0 : index
    %41 = vector.load %arg5[%c0_22, %c0_23] : memref<128x128xbf16, #tpu.memory_space<vmem>>, vector<32x128xbf16>
    %cst_24 = arith.constant dense<0.000000e+00> : vector<16x128xf32>
    %42 = tpu.matmul %40, %41, %cst_24 {dimension_numbers = #tpu.dot_dimension_numbers<[1], [0], [0], [1], [0, 0, 1, 1], [], []>} : vector<16x32xbf16>, vector<32x128xbf16>, vector<16x128xf32> -> vector<16x128xf32>
    %43 = arith.addf %20, %42 : vector<16x128xf32>
    %44 = vector.extract_strided_slice %7 {offsets = [0, 32], sizes = [16, 32], strides = [1, 1]} : vector<16x128xf32> to vector<16x32xf32>
    %45 = arith.truncf %44 : vector<16x32xf32> to vector<16x32xbf16>
    %46 = vector.extract_strided_slice %12 {offsets = [0, 32], sizes = [16, 32], strides = [1, 1]} : vector<16x128xf32> to vector<16x32xf32>
    %47 = arith.truncf %46 : vector<16x32xf32> to vector<16x32xbf16>
    %48 = vector.extract_strided_slice %17 {offsets = [0, 32], sizes = [16, 32], strides = [1, 1]} : vector<16x128xf32> to vector<16x32xf32>
    %49 = arith.truncf %48 : vector<16x32xf32> to vector<16x32xbf16>
    %cst_25 = arith.constant dense<0.000000e+00> : vector<16x16xf32>
    %50 = tpu.matmul %45, %47, %cst_25 {dimension_numbers = #tpu.dot_dimension_numbers<[1], [1], [0], [0], [0, 0, 1, 0], [], []>} : vector<16x32xbf16>, vector<16x32xbf16>, vector<16x16xf32> -> vector<16x16xf32>
    %cst_26 = arith.constant dense<0xFF800000> : vector<16xf32>
    %51 = vector.multi_reduction <maximumf>, %50, %cst_26 [1] : vector<16x16xf32> to vector<16xf32>
    %52 = vector.shape_cast %51 : vector<16xf32> to vector<16x1xf32>
    %53 = vector.broadcast %52 : vector<16x1xf32> to vector<16x16xf32>
    %54 = arith.subf %50, %53 : vector<16x16xf32>
    %55 = math.exp %54 : vector<16x16xf32>
    %cst_27 = arith.constant dense<0.000000e+00> : vector<16xf32>
    %56 = vector.multi_reduction <add>, %55, %cst_27 [1] : vector<16x16xf32> to vector<16xf32>
    %57 = vector.shape_cast %56 : vector<16xf32> to vector<16x1xf32>
    %58 = tpu.reciprocal %57 {approx = true} : vector<16x1xf32> -> vector<16x1xf32>
    %59 = vector.broadcast %58 : vector<16x1xf32> to vector<16x16xf32>
    %60 = arith.mulf %55, %59 : vector<16x16xf32>
    %61 = arith.truncf %60 : vector<16x16xf32> to vector<16x16xbf16>
    %cst_28 = arith.constant dense<0.000000e+00> : vector<16x32xf32>
    %62 = tpu.matmul %61, %49, %cst_28 {dimension_numbers = #tpu.dot_dimension_numbers<[1], [0], [0], [1], [0, 0, 1, 1], [], []>} : vector<16x16xbf16>, vector<16x32xbf16>, vector<16x32xf32> -> vector<16x32xf32>
    %63 = arith.truncf %62 : vector<16x32xf32> to vector<16x32xbf16>
    %c32 = arith.constant 32 : index
    %c0_29 = arith.constant 0 : index
    %64 = vector.load %arg5[%c32, %c0_29] : memref<128x128xbf16, #tpu.memory_space<vmem>>, vector<32x128xbf16>
    %cst_30 = arith.constant dense<0.000000e+00> : vector<16x128xf32>
    %65 = tpu.matmul %63, %64, %cst_30 {dimension_numbers = #tpu.dot_dimension_numbers<[1], [0], [0], [1], [0, 0, 1, 1], [], []>} : vector<16x32xbf16>, vector<32x128xbf16>, vector<16x128xf32> -> vector<16x128xf32>
    %66 = arith.addf %43, %65 : vector<16x128xf32>
    %67 = vector.extract_strided_slice %7 {offsets = [0, 64], sizes = [16, 32], strides = [1, 1]} : vector<16x128xf32> to vector<16x32xf32>
    %68 = arith.truncf %67 : vector<16x32xf32> to vector<16x32xbf16>
    %69 = vector.extract_strided_slice %12 {offsets = [0, 64], sizes = [16, 32], strides = [1, 1]} : vector<16x128xf32> to vector<16x32xf32>
    %70 = arith.truncf %69 : vector<16x32xf32> to vector<16x32xbf16>
    %71 = vector.extract_strided_slice %17 {offsets = [0, 64], sizes = [16, 32], strides = [1, 1]} : vector<16x128xf32> to vector<16x32xf32>
    %72 = arith.truncf %71 : vector<16x32xf32> to vector<16x32xbf16>
    %cst_31 = arith.constant dense<0.000000e+00> : vector<16x16xf32>
    %73 = tpu.matmul %68, %70, %cst_31 {dimension_numbers = #tpu.dot_dimension_numbers<[1], [1], [0], [0], [0, 0, 1, 0], [], []>} : vector<16x32xbf16>, vector<16x32xbf16>, vector<16x16xf32> -> vector<16x16xf32>
    %cst_32 = arith.constant dense<0xFF800000> : vector<16xf32>
    %74 = vector.multi_reduction <maximumf>, %73, %cst_32 [1] : vector<16x16xf32> to vector<16xf32>
    %75 = vector.shape_cast %74 : vector<16xf32> to vector<16x1xf32>
    %76 = vector.broadcast %75 : vector<16x1xf32> to vector<16x16xf32>
    %77 = arith.subf %73, %76 : vector<16x16xf32>
    %78 = math.exp %77 : vector<16x16xf32>
    %cst_33 = arith.constant dense<0.000000e+00> : vector<16xf32>
    %79 = vector.multi_reduction <add>, %78, %cst_33 [1] : vector<16x16xf32> to vector<16xf32>
    %80 = vector.shape_cast %79 : vector<16xf32> to vector<16x1xf32>
    %81 = tpu.reciprocal %80 {approx = true} : vector<16x1xf32> -> vector<16x1xf32>
    %82 = vector.broadcast %81 : vector<16x1xf32> to vector<16x16xf32>
    %83 = arith.mulf %78, %82 : vector<16x16xf32>
    %84 = arith.truncf %83 : vector<16x16xf32> to vector<16x16xbf16>
    %cst_34 = arith.constant dense<0.000000e+00> : vector<16x32xf32>
    %85 = tpu.matmul %84, %72, %cst_34 {dimension_numbers = #tpu.dot_dimension_numbers<[1], [0], [0], [1], [0, 0, 1, 1], [], []>} : vector<16x16xbf16>, vector<16x32xbf16>, vector<16x32xf32> -> vector<16x32xf32>
    %86 = arith.truncf %85 : vector<16x32xf32> to vector<16x32xbf16>
    %c64 = arith.constant 64 : index
    %c0_35 = arith.constant 0 : index
    %87 = vector.load %arg5[%c64, %c0_35] : memref<128x128xbf16, #tpu.memory_space<vmem>>, vector<32x128xbf16>
    %cst_36 = arith.constant dense<0.000000e+00> : vector<16x128xf32>
    %88 = tpu.matmul %86, %87, %cst_36 {dimension_numbers = #tpu.dot_dimension_numbers<[1], [0], [0], [1], [0, 0, 1, 1], [], []>} : vector<16x32xbf16>, vector<32x128xbf16>, vector<16x128xf32> -> vector<16x128xf32>
    %89 = arith.addf %66, %88 : vector<16x128xf32>
    %90 = vector.extract_strided_slice %7 {offsets = [0, 96], sizes = [16, 32], strides = [1, 1]} : vector<16x128xf32> to vector<16x32xf32>
    %91 = arith.truncf %90 : vector<16x32xf32> to vector<16x32xbf16>
    %92 = vector.extract_strided_slice %12 {offsets = [0, 96], sizes = [16, 32], strides = [1, 1]} : vector<16x128xf32> to vector<16x32xf32>
    %93 = arith.truncf %92 : vector<16x32xf32> to vector<16x32xbf16>
    %94 = vector.extract_strided_slice %17 {offsets = [0, 96], sizes = [16, 32], strides = [1, 1]} : vector<16x128xf32> to vector<16x32xf32>
    %95 = arith.truncf %94 : vector<16x32xf32> to vector<16x32xbf16>
    %cst_37 = arith.constant dense<0.000000e+00> : vector<16x16xf32>
    %96 = tpu.matmul %91, %93, %cst_37 {dimension_numbers = #tpu.dot_dimension_numbers<[1], [1], [0], [0], [0, 0, 1, 0], [], []>} : vector<16x32xbf16>, vector<16x32xbf16>, vector<16x16xf32> -> vector<16x16xf32>
    %cst_38 = arith.constant dense<0xFF800000> : vector<16xf32>
    %97 = vector.multi_reduction <maximumf>, %96, %cst_38 [1] : vector<16x16xf32> to vector<16xf32>
    %98 = vector.shape_cast %97 : vector<16xf32> to vector<16x1xf32>
    %99 = vector.broadcast %98 : vector<16x1xf32> to vector<16x16xf32>
    %100 = arith.subf %96, %99 : vector<16x16xf32>
    %101 = math.exp %100 : vector<16x16xf32>
    %cst_39 = arith.constant dense<0.000000e+00> : vector<16xf32>
    %102 = vector.multi_reduction <add>, %101, %cst_39 [1] : vector<16x16xf32> to vector<16xf32>
    %103 = vector.shape_cast %102 : vector<16xf32> to vector<16x1xf32>
    %104 = tpu.reciprocal %103 {approx = true} : vector<16x1xf32> -> vector<16x1xf32>
    %105 = vector.broadcast %104 : vector<16x1xf32> to vector<16x16xf32>
    %106 = arith.mulf %101, %105 : vector<16x16xf32>
    %107 = arith.truncf %106 : vector<16x16xf32> to vector<16x16xbf16>
    %cst_40 = arith.constant dense<0.000000e+00> : vector<16x32xf32>
    %108 = tpu.matmul %107, %95, %cst_40 {dimension_numbers = #tpu.dot_dimension_numbers<[1], [0], [0], [1], [0, 0, 1, 1], [], []>} : vector<16x16xbf16>, vector<16x32xbf16>, vector<16x32xf32> -> vector<16x32xf32>
    %109 = arith.truncf %108 : vector<16x32xf32> to vector<16x32xbf16>
    %c96 = arith.constant 96 : index
    %c0_41 = arith.constant 0 : index
    %110 = vector.load %arg5[%c96, %c0_41] : memref<128x128xbf16, #tpu.memory_space<vmem>>, vector<32x128xbf16>
    %cst_42 = arith.constant dense<0.000000e+00> : vector<16x128xf32>
    %111 = tpu.matmul %109, %110, %cst_42 {dimension_numbers = #tpu.dot_dimension_numbers<[1], [0], [0], [1], [0, 0, 1, 1], [], []>} : vector<16x32xbf16>, vector<32x128xbf16>, vector<16x128xf32> -> vector<16x128xf32>
    %112 = arith.addf %89, %111 : vector<16x128xf32>
    %113 = arith.truncf %112 : vector<16x128xf32> to vector<16x128xbf16>
    %c0_43 = arith.constant 0 : index
    %c0_44 = arith.constant 0 : index
    %114 = vector.load %arg6[%c0_43, %c0_44] : memref<128x128xbf16, #tpu.memory_space<vmem>>, vector<128x128xbf16>
    %cst_45 = arith.constant dense<0.000000e+00> : vector<16x128xf32>
    %115 = tpu.matmul %113, %114, %cst_45 {dimension_numbers = #tpu.dot_dimension_numbers<[1], [0], [0], [1], [0, 0, 1, 1], [], []>} : vector<16x128xbf16>, vector<128x128xbf16>, vector<16x128xf32> -> vector<16x128xf32>
    %116 = arith.addf %115, %112 : vector<16x128xf32>
    %c0_46 = arith.constant 0 : index
    %c0_47 = arith.constant 0 : index
    %c0_48 = arith.constant 0 : index
    %117 = vector.load %arg11[%c0_46, %c0_47, %c0_48] : memref<1x16x128xf32, #tpu.memory_space<vmem>>, vector<1x16x128xf32>
    %118 = vector.shape_cast %117 : vector<1x16x128xf32> to vector<16x128xf32>
    %119 = vector.shape_cast %116 : vector<16x128xf32> to vector<1x16x128xf32>
    tpu.vector_store %arg11[%c0_46, %c0_47, %c0_48], %119 {strides = array<i32>} : memref<1x16x128xf32, #tpu.memory_space<vmem>>, vector<1x16x128xf32>,
    return
  }
  func.func @transform_0(%arg0: i32) -> (i32, i32, i32) {
    %c0_i32 = arith.constant 0 : i32
    %c0_i32_0 = arith.constant 0 : i32
    %c0_i32_1 = arith.constant 0 : i32
    return %arg0, %c0_i32, %c0_i32_0 : i32, i32, i32
  }
  func.func @transform_1(%arg0: i32) -> (i32, i32) {
    %c0_i32 = arith.constant 0 : i32
    %c0_i32_0 = arith.constant 0 : i32
    %c0_i32_1 = arith.constant 0 : i32
    return %c0_i32, %c0_i32_0 : i32, i32
  }
  func.func @transform_2(%arg0: i32) -> (i32, i32) {
    %c0_i32 = arith.constant 0 : i32
    %c0_i32_0 = arith.constant 0 : i32
    %c0_i32_1 = arith.constant 0 : i32
    return %c0_i32, %c0_i32_0 : i32, i32
  }
  func.func @transform_3(%arg0: i32) -> (i32, i32) {
    %c0_i32 = arith.constant 0 : i32
    %c0_i32_0 = arith.constant 0 : i32
    %c0_i32_1 = arith.constant 0 : i32
    return %c0_i32, %c0_i32_0 : i32, i32
  }
  func.func @transform_4(%arg0: i32) -> (i32, i32) {
    %c0_i32 = arith.constant 0 : i32
    %c0_i32_0 = arith.constant 0 : i32
    %c0_i32_1 = arith.constant 0 : i32
    return %c0_i32, %c0_i32_0 : i32, i32
  }
  func.func @transform_5(%arg0: i32) -> (i32, i32) {
    %c0_i32 = arith.constant 0 : i32
    %c0_i32_0 = arith.constant 0 : i32
    %c0_i32_1 = arith.constant 0 : i32
    return %c0_i32, %c0_i32_0 : i32, i32
  }
  func.func @transform_6(%arg0: i32) -> (i32, i32) {
    %c0_i32 = arith.constant 0 : i32
    %c0_i32_0 = arith.constant 0 : i32
    %c0_i32_1 = arith.constant 0 : i32
    return %c0_i32, %c0_i32_0 : i32, i32
  }
  func.func @transform_7(%arg0: i32) -> (i32, i32) {
    %c0_i32 = arith.constant 0 : i32
    %c0_i32_0 = arith.constant 0 : i32
    %c0_i32_1 = arith.constant 0 : i32
    return %c0_i32, %c0_i32_0 : i32, i32
  }
  func.func @transform_8(%arg0: i32) -> (i32, i32) {
    %c0_i32 = arith.constant 0 : i32
    %c0_i32_0 = arith.constant 0 : i32
    %c0_i32_1 = arith.constant 0 : i32
    return %c0_i32, %c0_i32_0 : i32, i32
  }
  func.func @transform_9(%arg0: i32) -> (i32, i32) {
    %c0_i32 = arith.constant 0 : i32
    %c0_i32_0 = arith.constant 0 : i32
    %c0_i32_1 = arith.constant 0 : i32
    return %c0_i32, %c0_i32_0 : i32, i32
  }
  func.func @transform_10(%arg0: i32) -> (i32, i32, i32) {
    %c0_i32 = arith.constant 0 : i32
    %c0_i32_0 = arith.constant 0 : i32
    %c0_i32_1 = arith.constant 0 : i32
    return %arg0, %c0_i32, %c0_i32_0 : i32, i32, i32
  }
}

module attributes {stable_mosaic.version = 11 : i64} {
  func.func @_transformer_layer_kernel(%arg0: i32, %arg1: memref<1x16x128xf32, #tpu.memory_space<vmem>>, %arg2: memref<128x128xbf16, #tpu.memory_space<vmem>>, %arg3: memref<128x128xbf16, #tpu.memory_space<vmem>>, %arg4: memref<128x128xbf16, #tpu.memory_space<vmem>>, %arg5: memref<128x128xbf16, #tpu.memory_space<vmem>>, %arg6: memref<128x128xbf16, #tpu.memory_space<vmem>>, %arg7: memref<1x128xf32, #tpu.memory_space<vmem>>, %arg8: memref<1x128xf32, #tpu.memory_space<vmem>>, %arg9: memref<1x128xf32, #tpu.memory_space<vmem>>, %arg10: memref<1x128xf32, #tpu.memory_space<vmem>>, %arg11: memref<1x16x128xf32, #tpu.memory_space<vmem>>) attributes {dimension_semantics = [#tpu.dimension_semantics<parallel>], iteration_bounds = array<i64: 2>, scalar_prefetch = 0 : i64, scratch_operands = 0 : i64, tpu.core_type = #tpu.core_type<tc>, window_params = [{transform_indices = @transform_0, window_bounds = array<i64: 1, 16, 128>}, {pipeline_mode = #tpu.pipeline_mode<synchronous>, transform_indices = @transform_1, window_bounds = array<i64: 128, 128>}, {pipeline_mode = #tpu.pipeline_mode<synchronous>, transform_indices = @transform_2, window_bounds = array<i64: 128, 128>}, {pipeline_mode = #tpu.pipeline_mode<synchronous>, transform_indices = @transform_3, window_bounds = array<i64: 128, 128>}, {pipeline_mode = #tpu.pipeline_mode<synchronous>, transform_indices = @transform_4, window_bounds = array<i64: 128, 128>}, {pipeline_mode = #tpu.pipeline_mode<synchronous>, transform_indices = @transform_5, window_bounds = array<i64: 128, 128>}, {pipeline_mode = #tpu.pipeline_mode<synchronous>, transform_indices = @transform_6, window_bounds = array<i64: 1, 128>}, {pipeline_mode = #tpu.pipeline_mode<synchronous>, transform_indices = @transform_7, window_bounds = array<i64: 1, 128>}, {pipeline_mode = #tpu.pipeline_mode<synchronous>, transform_indices = @transform_8, window_bounds = array<i64: 1, 128>}, {pipeline_mode = #tpu.pipeline_mode<synchronous>, transform_indices = @transform_9, window_bounds = array<i64: 1, 128>}, {transform_indices = @transform_10, window_bounds = array<i64: 1, 16, 128>}]} {
    %c0 = arith.constant 0 : index
    %c0_0 = arith.constant 0 : index
    %c0_1 = arith.constant 0 : index
    %0 = vector.load %arg1[%c0, %c0_0, %c0_1] : memref<1x16x128xf32, #tpu.memory_space<vmem>>, vector<1x16x128xf32>
    %1 = vector.shape_cast %0 : vector<1x16x128xf32> to vector<16x128xf32>
    %2 = arith.truncf %1 : vector<16x128xf32> to vector<16x128xbf16>
    %c0_2 = arith.constant 0 : index
    %c0_3 = arith.constant 0 : index
    %3 = vector.load %arg2[%c0_2, %c0_3] : memref<128x128xbf16, #tpu.memory_space<vmem>>, vector<128x128xbf16>
    %cst = arith.constant dense<0.000000e+00> : vector<16x128xf32>
    %4 = tpu.matmul %2, %3, %cst {dimension_numbers = #tpu.dot_dimension_numbers<[1], [0], [0], [1], [0, 0, 1, 1], [], []>} : vector<16x128xbf16>, vector<128x128xbf16>, vector<16x128xf32> -> vector<16x128xf32>
    %c0_4 = arith.constant 0 : index
    %c0_5 = arith.constant 0 : index
    %5 = vector.load %arg7[%c0_4, %c0_5] : memref<1x128xf32, #tpu.memory_space<vmem>>, vector<1x128xf32>
    %6 = vector.broadcast %5 : vector<1x128xf32> to vector<16x128xf32>
    %7 = arith.addf %4, %6 : vector<16x128xf32>
    %c0_6 = arith.constant 0 : index
    %c0_7 = arith.constant 0 : index
    %8 = vector.load %arg3[%c0_6, %c0_7] : memref<128x128xbf16, #tpu.memory_space<vmem>>, vector<128x128xbf16>
    %cst_8 = arith.constant dense<0.000000e+00> : vector<16x128xf32>
    %9 = tpu.matmul %2, %8, %cst_8 {dimension_numbers = #tpu.dot_dimension_numbers<[1], [0], [0], [1], [0, 0, 1, 1], [], []>} : vector<16x128xbf16>, vector<128x128xbf16>, vector<16x128xf32> -> vector<16x128xf32>
    %c0_9 = arith.constant 0 : index
    %c0_10 = arith.constant 0 : index
    %10 = vector.load %arg8[%c0_9, %c0_10] : memref<1x128xf32, #tpu.memory_space<vmem>>, vector<1x128xf32>
    %11 = vector.broadcast %10 : vector<1x128xf32> to vector<16x128xf32>
    %12 = arith.addf %9, %11 : vector<16x128xf32>
    %c0_11 = arith.constant 0 : index
    %c0_12 = arith.constant 0 : index
    %13 = vector.load %arg4[%c0_11, %c0_12] : memref<128x128xbf16, #tpu.memory_space<vmem>>, vector<128x128xbf16>
    %cst_13 = arith.constant dense<0.000000e+00> : vector<16x128xf32>
    %14 = tpu.matmul %2, %13, %cst_13 {dimension_numbers = #tpu.dot_dimension_numbers<[1], [0], [0], [1], [0, 0, 1, 1], [], []>} : vector<16x128xbf16>, vector<128x128xbf16>, vector<16x128xf32> -> vector<16x128xf32>
    %c0_14 = arith.constant 0 : index
    %c0_15 = arith.constant 0 : index
    %15 = vector.load %arg9[%c0_14, %c0_15] : memref<1x128xf32, #tpu.memory_space<vmem>>, vector<1x128xf32>
    %16 = vector.broadcast %15 : vector<1x128xf32> to vector<16x128xf32>
    %17 = arith.addf %14, %16 : vector<16x128xf32>
    %c0_16 = arith.constant 0 : index
    %c0_17 = arith.constant 0 : index
    %18 = vector.load %arg10[%c0_16, %c0_17] : memref<1x128xf32, #tpu.memory_space<vmem>>, vector<1x128xf32>
    %19 = vector.broadcast %18 : vector<1x128xf32> to vector<16x128xf32>
    %20 = arith.addf %1, %19 : vector<16x128xf32>
    %21 = vector.extract_strided_slice %7 {offsets = [0, 0], sizes = [16, 32], strides = [1, 1]} : vector<16x128xf32> to vector<16x32xf32>
    %22 = arith.truncf %21 : vector<16x32xf32> to vector<16x32xbf16>
    %23 = vector.extract_strided_slice %12 {offsets = [0, 0], sizes = [16, 32], strides = [1, 1]} : vector<16x128xf32> to vector<16x32xf32>
    %24 = arith.truncf %23 : vector<16x32xf32> to vector<16x32xbf16>
    %25 = vector.extract_strided_slice %17 {offsets = [0, 0], sizes = [16, 32], strides = [1, 1]} : vector<16x128xf32> to vector<16x32xf32>
    %26 = arith.truncf %25 : vector<16x32xf32> to vector<16x32xbf16>
    %cst_18 = arith.constant dense<0.000000e+00> : vector<16x16xf32>
    %27 = tpu.matmul %22, %24, %cst_18 {dimension_numbers = #tpu.dot_dimension_numbers<[1], [1], [0], [0], [0, 0, 1, 0], [], []>} : vector<16x32xbf16>, vector<16x32xbf16>, vector<16x16xf32> -> vector<16x16xf32>
    %cst_19 = arith.constant dense<0xFF800000> : vector<16xf32>
    %28 = vector.multi_reduction <maximumf>, %27, %cst_19 [1] : vector<16x16xf32> to vector<16xf32>
    %29 = vector.shape_cast %28 : vector<16xf32> to vector<16x1xf32>
    %30 = vector.broadcast %29 : vector<16x1xf32> to vector<16x16xf32>
    %31 = arith.subf %27, %30 : vector<16x16xf32>
    %32 = math.exp %31 : vector<16x16xf32>
    %cst_20 = arith.constant dense<0.000000e+00> : vector<16xf32>
    %33 = vector.multi_reduction <add>, %32, %cst_20 [1] : vector<16x16xf32> to vector<16xf32>
    %34 = vector.shape_cast %33 : vector<16xf32> to vector<16x1xf32>
    %35 = tpu.reciprocal %34 {approx = true} : vector<16x1xf32> -> vector<16x1xf32>
    %36 = vector.broadcast %35 : vector<16x1xf32> to vector<16x16xf32>
    %37 = arith.mulf %32, %36 : vector<16x16xf32>
    %38 = arith.truncf %37 : vector<16x16xf32> to vector<16x16xbf16>
    %cst_21 = arith.constant dense<0.000000e+00> : vector<16x32xf32>
    %39 = tpu.matmul %38, %26, %cst_21 {dimension_numbers = #tpu.dot_dimension_numbers<[1], [0], [0], [1], [0, 0, 1, 1], [], []>} : vector<16x16xbf16>, vector<16x32xbf16>, vector<16x32xf32> -> vector<16x32xf32>
    %40 = arith.truncf %39 : vector<16x32xf32> to vector<16x32xbf16>
    %c0_22 = arith.constant 0 : index
    %c0_23 = arith.constant 0 : index
    %41 = vector.load %arg5[%c0_22, %c0_23] : memref<128x128xbf16, #tpu.memory_space<vmem>>, vector<32x128xbf16>
    %cst_24 = arith.constant dense<0.000000e+00> : vector<16x128xf32>
    %42 = tpu.matmul %40, %41, %cst_24 {dimension_numbers = #tpu.dot_dimension_numbers<[1], [0], [0], [1], [0, 0, 1, 1], [], []>} : vector<16x32xbf16>, vector<32x128xbf16>, vector<16x128xf32> -> vector<16x128xf32>
    %43 = arith.addf %20, %42 : vector<16x128xf32>
    %44 = vector.extract_strided_slice %7 {offsets = [0, 32], sizes = [16, 32], strides = [1, 1]} : vector<16x128xf32> to vector<16x32xf32>
    %45 = arith.truncf %44 : vector<16x32xf32> to vector<16x32xbf16>
    %46 = vector.extract_strided_slice %12 {offsets = [0, 32], sizes = [16, 32], strides = [1, 1]} : vector<16x128xf32> to vector<16x32xf32>
    %47 = arith.truncf %46 : vector<16x32xf32> to vector<16x32xbf16>
    %48 = vector.extract_strided_slice %17 {offsets = [0, 32], sizes = [16, 32], strides = [1, 1]} : vector<16x128xf32> to vector<16x32xf32>
    %49 = arith.truncf %48 : vector<16x32xf32> to vector<16x32xbf16>
    %cst_25 = arith.constant dense<0.000000e+00> : vector<16x16xf32>
    %50 = tpu.matmul %45, %47, %cst_25 {dimension_numbers = #tpu.dot_dimension_numbers<[1], [1], [0], [0], [0, 0, 1, 0], [], []>} : vector<16x32xbf16>, vector<16x32xbf16>, vector<16x16xf32> -> vector<16x16xf32>
    %cst_26 = arith.constant dense<0xFF800000> : vector<16xf32>
    %51 = vector.multi_reduction <maximumf>, %50, %cst_26 [1] : vector<16x16xf32> to vector<16xf32>
    %52 = vector.shape_cast %51 : vector<16xf32> to vector<16x1xf32>
    %53 = vector.broadcast %52 : vector<16x1xf32> to vector<16x16xf32>
    %54 = arith.subf %50, %53 : vector<16x16xf32>
    %55 = math.exp %54 : vector<16x16xf32>
    %cst_27 = arith.constant dense<0.000000e+00> : vector<16xf32>
    %56 = vector.multi_reduction <add>, %55, %cst_27 [1] : vector<16x16xf32> to vector<16xf32>
    %57 = vector.shape_cast %56 : vector<16xf32> to vector<16x1xf32>
    %58 = tpu.reciprocal %57 {approx = true} : vector<16x1xf32> -> vector<16x1xf32>
    %59 = vector.broadcast %58 : vector<16x1xf32> to vector<16x16xf32>
    %60 = arith.mulf %55, %59 : vector<16x16xf32>
    %61 = arith.truncf %60 : vector<16x16xf32> to vector<16x16xbf16>
    %cst_28 = arith.constant dense<0.000000e+00> : vector<16x32xf32>
    %62 = tpu.matmul %61, %49, %cst_28 {dimension_numbers = #tpu.dot_dimension_numbers<[1], [0], [0], [1], [0, 0, 1, 1], [], []>} : vector<16x16xbf16>, vector<16x32xbf16>, vector<16x32xf32> -> vector<16x32xf32>
    %63 = arith.truncf %62 : vector<16x32xf32> to vector<16x32xbf16>
    %c32 = arith.constant 32 : index
    %c0_29 = arith.constant 0 : index
    %64 = vector.load %arg5[%c32, %c0_29] : memref<128x128xbf16, #tpu.memory_space<vmem>>, vector<32x128xbf16>
    %cst_30 = arith.constant dense<0.000000e+00> : vector<16x128xf32>
    %65 = tpu.matmul %63, %64, %cst_30 {dimension_numbers = #tpu.dot_dimension_numbers<[1], [0], [0], [1], [0, 0, 1, 1], [], []>} : vector<16x32xbf16>, vector<32x128xbf16>, vector<16x128xf32> -> vector<16x128xf32>
    %66 = arith.addf %43, %65 : vector<16x128xf32>
    %67 = vector.extract_strided_slice %7 {offsets = [0, 64], sizes = [16, 32], strides = [1, 1]} : vector<16x128xf32> to vector<16x32xf32>
    %68 = arith.truncf %67 : vector<16x32xf32> to vector<16x32xbf16>
    %69 = vector.extract_strided_slice %12 {offsets = [0, 64], sizes = [16, 32], strides = [1, 1]} : vector<16x128xf32> to vector<16x32xf32>
    %70 = arith.truncf %69 : vector<16x32xf32> to vector<16x32xbf16>
    %71 = vector.extract_strided_slice %17 {offsets = [0, 64], sizes = [16, 32], strides = [1, 1]} : vector<16x128xf32> to vector<16x32xf32>
    %72 = arith.truncf %71 : vector<16x32xf32> to vector<16x32xbf16>
    %cst_31 = arith.constant dense<0.000000e+00> : vector<16x16xf32>
    %73 = tpu.matmul %68, %70, %cst_31 {dimension_numbers = #tpu.dot_dimension_numbers<[1], [1], [0], [0], [0, 0, 1, 0], [], []>} : vector<16x32xbf16>, vector<16x32xbf16>, vector<16x16xf32> -> vector<16x16xf32>
    %cst_32 = arith.constant dense<0xFF800000> : vector<16xf32>
    %74 = vector.multi_reduction <maximumf>, %73, %cst_32 [1] : vector<16x16xf32> to vector<16xf32>
    %75 = vector.shape_cast %74 : vector<16xf32> to vector<16x1xf32>
    %76 = vector.broadcast %75 : vector<16x1xf32> to vector<16x16xf32>
    %77 = arith.subf %73, %76 : vector<16x16xf32>
    %78 = math.exp %77 : vector<16x16xf32>
    %cst_33 = arith.constant dense<0.000000e+00> : vector<16xf32>
    %79 = vector.multi_reduction <add>, %78, %cst_33 [1] : vector<16x16xf32> to vector<16xf32>
    %80 = vector.shape_cast %79 : vector<16xf32> to vector<16x1xf32>
    %81 = tpu.reciprocal %80 {approx = true} : vector<16x1xf32> -> vector<16x1xf32>
    %82 = vector.broadcast %81 : vector<16x1xf32> to vector<16x16xf32>
    %83 = arith.mulf %78, %82 : vector<16x16xf32>
    %84 = arith.truncf %83 : vector<16x16xf32> to vector<16x16xbf16>
    %cst_34 = arith.constant dense<0.000000e+00> : vector<16x32xf32>
    %85 = tpu.matmul %84, %72, %cst_34 {dimension_numbers = #tpu.dot_dimension_numbers<[1], [0], [0], [1], [0, 0, 1, 1], [], []>} : vector<16x16xbf16>, vector<16x32xbf16>, vector<16x32xf32> -> vector<16x32xf32>
    %86 = arith.truncf %85 : vector<16x32xf32> to vector<16x32xbf16>
    %c64 = arith.constant 64 : index
    %c0_35 = arith.constant 0 : index
    %87 = vector.load %arg5[%c64, %c0_35] : memref<128x128xbf16, #tpu.memory_space<vmem>>, vector<32x128xbf16>
    %cst_36 = arith.constant dense<0.000000e+00> : vector<16x128xf32>
    %88 = tpu.matmul %86, %87, %cst_36 {dimension_numbers = #tpu.dot_dimension_numbers<[1], [0], [0], [1], [0, 0, 1, 1], [], []>} : vector<16x32xbf16>, vector<32x128xbf16>, vector<16x128xf32> -> vector<16x128xf32>
    %89 = arith.addf %66, %88 : vector<16x128xf32>
    %90 = vector.extract_strided_slice %7 {offsets = [0, 96], sizes = [16, 32], strides = [1, 1]} : vector<16x128xf32> to vector<16x32xf32>
    %91 = arith.truncf %90 : vector<16x32xf32> to vector<16x32xbf16>
    %92 = vector.extract_strided_slice %12 {offsets = [0, 96], sizes = [16, 32], strides = [1, 1]} : vector<16x128xf32> to vector<16x32xf32>
    %93 = arith.truncf %92 : vector<16x32xf32> to vector<16x32xbf16>
    %94 = vector.extract_strided_slice %17 {offsets = [0, 96], sizes = [16, 32], strides = [1, 1]} : vector<16x128xf32> to vector<16x32xf32>
    %95 = arith.truncf %94 : vector<16x32xf32> to vector<16x32xbf16>
    %cst_37 = arith.constant dense<0.000000e+00> : vector<16x16xf32>
    %96 = tpu.matmul %91, %93, %cst_37 {dimension_numbers = #tpu.dot_dimension_numbers<[1], [1], [0], [0], [0, 0, 1, 0], [], []>} : vector<16x32xbf16>, vector<16x32xbf16>, vector<16x16xf32> -> vector<16x16xf32>
    %cst_38 = arith.constant dense<0xFF800000> : vector<16xf32>
    %97 = vector.multi_reduction <maximumf>, %96, %cst_38 [1] : vector<16x16xf32> to vector<16xf32>
    %98 = vector.shape_cast %97 : vector<16xf32> to vector<16x1xf32>
    %99 = vector.broadcast %98 : vector<16x1xf32> to vector<16x16xf32>
    %100 = arith.subf %96, %99 : vector<16x16xf32>
    %101 = math.exp %100 : vector<16x16xf32>
    %cst_39 = arith.constant dense<0.000000e+00> : vector<16xf32>
    %102 = vector.multi_reduction <add>, %101, %cst_39 [1] : vector<16x16xf32> to vector<16xf32>
    %103 = vector.shape_cast %102 : vector<16xf32> to vector<16x1xf32>
    %104 = tpu.reciprocal %103 {approx = true} : vector<16x1xf32> -> vector<16x1xf32>
    %105 = vector.broadcast %104 : vector<16x1xf32> to vector<16x16xf32>
    %106 = arith.mulf %101, %105 : vector<16x16xf32>
    %107 = arith.truncf %106 : vector<16x16xf32> to vector<16x16xbf16>
    %cst_40 = arith.constant dense<0.000000e+00> : vector<16x32xf32>
    %108 = tpu.matmul %107, %95, %cst_40 {dimension_numbers = #tpu.dot_dimension_numbers<[1], [0], [0], [1], [0, 0, 1, 1], [], []>} : vector<16x16xbf16>, vector<16x32xbf16>, vector<16x32xf32> -> vector<16x32xf32>
    %109 = arith.truncf %108 : vector<16x32xf32> to vector<16x32xbf16>
    %c96 = arith.constant 96 : index
    %c0_41 = arith.constant 0 : index
    %110 = vector.load %arg5[%c96, %c0_41] : memref<128x128xbf16, #tpu.memory_space<vmem>>, vector<32x128xbf16>
    %cst_42 = arith.constant dense<0.000000e+00> : vector<16x128xf32>
    %111 = tpu.matmul %109, %110, %cst_42 {dimension_numbers = #tpu.dot_dimension_numbers<[1], [0], [0], [1], [0, 0, 1, 1], [], []>} : vector<16x32xbf16>, vector<32x128xbf16>, vector<16x128xf32> -> vector<16x128xf32>
    %112 = arith.addf %89, %111 : vector<16x128xf32>
    %113 = arith.truncf %112 : vector<16x128xf32> to vector<16x128xbf16>
    %c0_43 = arith.constant 0 : index
    %c0_44 = arith.constant 0 : index
    %114 = vector.load %arg6[%c0_43, %c0_44] : memref<128x128xbf16, #tpu.memory_space<vmem>>, vector<128x128xbf16>
    %cst_45 = arith.constant dense<0.000000e+00> : vector<16x128xf32>
    %115 = tpu.matmul %113, %114, %cst_45 {dimension_numbers = #tpu.dot_dimension_numbers<[1], [0], [0], [1], [0, 0, 1, 1], [], []>} : vector<16x128xbf16>, vector<128x128xbf16>, vector<16x128xf32> -> vector<16x128xf32>
    %116 = arith.addf %115, %112 : vector<16x128xf32>
    %c0_46 = arith.constant 0 : index
    %c0_47 = arith.constant 0 : index
    %c0_48 = arith.constant 0 : index
    %117 = vector.load %arg11[%c0_46, %c0_47, %c0_48] : memref<1x16x128xf32, #tpu.memory_space<vmem>>, vector<1x16x128xf32>
    %118 = vector.shape_cast %117 : vector<1x16x128xf32> to vector<16x128xf32>
    %119 = vector.shape_cast %116 : vector<16x128xf32> to vector<1x16x128xf32>
    tpu.vector_store %arg11[%c0_46, %c0_47, %c0_48], %119 {strides = array<i32>} : memref<1x16x128xf32, #tpu.memory_space<vmem>>, vector<1x16x128xf32>,
    return
  }
  func.func @transform_0(%arg0: i32) -> (i32, i32, i32) {
    %c0_i32 = arith.constant 0 : i32
    %c0_i32_0 = arith.constant 0 : i32
    %c0_i32_1 = arith.constant 0 : i32
    return %arg0, %c0_i32, %c0_i32_0 : i32, i32, i32
  }
  func.func @transform_1(%arg0: i32) -> (i32, i32) {
    %c0_i32 = arith.constant 0 : i32
    %c0_i32_0 = arith.constant 0 : i32
    %c0_i32_1 = arith.constant 0 : i32
    return %c0_i32, %c0_i32_0 : i32, i32
  }
  func.func @transform_2(%arg0: i32) -> (i32, i32) {
    %c0_i32 = arith.constant 0 : i32
    %c0_i32_0 = arith.constant 0 : i32
    %c0_i32_1 = arith.constant 0 : i32
    return %c0_i32, %c0_i32_0 : i32, i32
  }
  func.func @transform_3(%arg0: i32) -> (i32, i32) {
    %c0_i32 = arith.constant 0 : i32
    %c0_i32_0 = arith.constant 0 : i32
    %c0_i32_1 = arith.constant 0 : i32
    return %c0_i32, %c0_i32_0 : i32, i32
  }
  func.func @transform_4(%arg0: i32) -> (i32, i32) {
    %c0_i32 = arith.constant 0 : i32
    %c0_i32_0 = arith.constant 0 : i32
    %c0_i32_1 = arith.constant 0 : i32
    return %c0_i32, %c0_i32_0 : i32, i32
  }
  func.func @transform_5(%arg0: i32) -> (i32, i32) {
    %c0_i32 = arith.constant 0 : i32
    %c0_i32_0 = arith.constant 0 : i32
    %c0_i32_1 = arith.constant 0 : i32
    return %c0_i32, %c0_i32_0 : i32, i32
  }
  func.func @transform_6(%arg0: i32) -> (i32, i32) {
    %c0_i32 = arith.constant 0 : i32
    %c0_i32_0 = arith.constant 0 : i32
    %c0_i32_1 = arith.constant 0 : i32
    return %c0_i32, %c0_i32_0 : i32, i32
  }
  func.func @transform_7(%arg0: i32) -> (i32, i32) {
    %c0_i32 = arith.constant 0 : i32
    %c0_i32_0 = arith.constant 0 : i32
    %c0_i32_1 = arith.constant 0 : i32
    return %c0_i32, %c0_i32_0 : i32, i32
  }
  func.func @transform_8(%arg0: i32) -> (i32, i32) {
    %c0_i32 = arith.constant 0 : i32
    %c0_i32_0 = arith.constant 0 : i32
    %c0_i32_1 = arith.constant 0 : i32
    return %c0_i32, %c0_i32_0 : i32, i32
  }
  func.func @transform_9(%arg0: i32) -> (i32, i32) {
    %c0_i32 = arith.constant 0 : i32
    %c0_i32_0 = arith.constant 0 : i32
    %c0_i32_1 = arith.constant 0 : i32
    return %c0_i32, %c0_i32_0 : i32, i32
  }
  func.func @transform_10(%arg0: i32) -> (i32, i32, i32) {
    %c0_i32 = arith.constant 0 : i32
    %c0_i32_0 = arith.constant 0 : i32
    %c0_i32_1 = arith.constant 0 : i32
    return %arg0, %c0_i32, %c0_i32_0 : i32, i32, i32
  }
}

</mosaic_0001>

<bundles_post_ra>
// kernel: tpu_custom_call.1
= control target key start
LH: loop header
LB: loop body
LE: loop exit
PB: predicated region body
PF: predicated region fallthrough
CT: control target
= control target key end

     0   :  { %s3086_s0 = inlined_call_operand.hbm [shape: f32[2,16,128], index: 0, kind: input, shape index: {}]   ;;  %s3087_s1 = inlined_call_operand.hbm [shape: bf16[128,128], index: 1, kind: input, shape index: {}]   ;;  %s3088_s2 = inlined_call_operand.hbm [shape: bf16[128,128], index: 2, kind: input, shape index: {}]   ;;  %s3089_s3 = inlined_call_operand.hbm [shape: bf16[128,128], index: 3, kind: input, shape index: {}]   ;;  %s3090_s4 = inlined_call_operand.hbm [shape: bf16[128,128], index: 4, kind: input, shape index: {}]   ;;  %s3091_s5 = inlined_call_operand.hbm [shape: bf16[128,128], index: 5, kind: input, shape index: {}]   ;;  %s3092_s6 = inlined_call_operand.vmem [shape: f32[1,128], index: 6, kind: input, shape index: {}]   ;;  %s3093_s7 = inlined_call_operand.vmem [shape: f32[1,128], index: 7, kind: input, shape index: {}]   ;;  %s3094_s8 = inlined_call_operand.vmem [shape: f32[1,128], index: 8, kind: input, shape index: {}]   ;;  %s3095_s9 = inlined_call_operand.vmem [shape: f32[1,128], index: 9, kind: input, shape index: {}]   ;;  %s3096_s10 = inlined_call_operand.hbm [shape: f32[2,16,128], index: 10, kind: output, shape index: {}]  }
   0x1   :  { %3101 = sst [smem:[#allocation19_spill]] %s3087_s1 }
   0x2   :  { %3102 = sst [smem:[#allocation20_spill]] %s3095_s9 }
   0x3   :  { %3103 = sst [smem:[#allocation21_spill]] %s3096_s10 }
   0x4   :  { %15 = vsyncpa [#allocation3], 0 }
   0x5   :  { %17 = vsyncpa [#allocation3 + $0x1], 0 }
   0x6   :  { %18 = vsyncpa [#allocation6], 0 }
   0x7   :  { %19 = vsyncpa [#allocation9], 0 }
   0x8   :  { %20 = vsyncpa [#allocation12], 0 }
   0x9   :  { %21 = vsyncpa [#allocation4], 0 }
   0xa   :  { %23 = vsyncpa [#allocation4 + $0x1], 0  ;;  %s2603_s13 = smov 0   ;;  %s2605_s14 = smov 0  }
   0xb   :  { %s2607_s15 = smov 0   ;;  %s2609_s16 = smov 0  }
   0xc LB: > { %s2530_s17 = smov [#allocation5]   ;;  %s2624_s19 = sadd.s32 4294967295, %s2528_s16   ;;  %s2528_s16 = sphi %s2609_s16, %s3128_s16   ;;  %s2524_s15 = sphi %s2607_s15, %s3127_s15   ;;  %s2520_s14 = sphi %s2605_s14, %s3126_s14   ;;  %s2516_s13 = sphi %s2603_s13, %s3125_s13  }
   0xd   : > { %s287_s18 = sshll.u32 %s2530_s17, 4  ;;  %p1781_p0 = scmp.ge.s32.totalorder %s2528_s16, 1  ;;  %s2629_s18 = int_to_ptr.vmem [resolvable:$true] %s287_s18 }
   0xe   : > { %p3098_p1 = scmp.eq.s32.totalorder %s2624_s19, 0  ;;  %p275_p2 = scmp.lt.s32.totalorder %s2528_s16, 3 }
   0xf   : > { %s2531_s21 = smov [#allocation8]   ;;  %s2532_s24 = smov [#allocation7]  }
  0x10   : > { %p2631_p3 = pnand %p1781_p0, %p275_p2  ;;  %s313_s22 = sshll.u32 %s2531_s21, 4  ;;  %s2644_s22 = int_to_ptr.vmem [resolvable:$true] %s313_s22 }
  0x11   : > { %s300_s25 = sshll.u32 %s2532_s24, 4  ;;  %s3106_s1 = sld [smem:[#allocation19_spill]]  ;;  %s2646_s25 = int_to_ptr.vmem [resolvable:$true] %s300_s25 }
  0x12   : > { %s3104_s20 = scalar_select %p2631_p3, 1, 0 }
  0x13   : > { %p2124_p5 = pneg %p2631_p3 }
  0x15   : > { %p2640_p6 = pnand %p2124_p5, %p3098_p1 }
  0x17   : > { %s2280_s28 = scalar_lea.hbm %s3106_s1, 1024  ;;  %p2656_p8 = pneg %p2640_p6 }
  0x18   : > { %p2281_p7 = scmp.ne.s32.totalorder %s3106_s1, %s2280_s28  ;;  %p2287_p11 = scmp.lt.u32.totalorder %s2280_s28, %s3106_s1 }
  0x1a   : > { %p2283_p9 = pnand %p2656_p8, %p2281_p7 }
  0x1c   : > { %p2284_p10 = pneg %p2283_p9 }
  0x1e   : > { %p2289_p12 = pnand %p2287_p11, %p2284_p10 }
  0x20   : > { %2292 = shalt.err (!%p2289_p12)
}
  0x21   : > { %s2293_s21 = scalar_lea.vmem %s2629_s18, 1024  ;;  %p2301_p5 = scmp.lt.s32.totalorder %s2629_s18, %s2629_s18 }
  0x22   : > { %p2294_p13 = scmp.ne.s32.totalorder %s2629_s18, %s2293_s21  ;;  %p2302_p4 = scmp.lt.s32.totalorder %s2293_s21, %s2293_s21 }
  0x24   : > { %p2296_p0 = pnand %p2294_p13, %p2656_p8  ;;  %p2303_p7 = por %p2302_p4, %p2301_p5 }
  0x26   : > { %p2297_p2 = pneg %p2296_p0 }
  0x28   : > { %p2304_p9 = pnand %p2303_p7, %p2297_p2 }
  0x2a   : > { %2307 = shalt.err (!%p2304_p9)
}
  0x2b   : > { %s2533_s24 = smov 64   ;;  %s2534_s26 = smov 4  }
  0x2c   : > { %2127 = dma.hbm_to_vmem [thread:$0]  (!%p2640_p6), %s3106_s1, 1024, %s2629_s18, [#allocation6], %s2533_s24, %s2533_s24, %s2534_s26  }
  0x2d   : > { %s2308_s12 = scalar_lea.hbm %s3089_s3, 1024 }
  0x2e   : > { %p2309_p4 = scmp.ne.s32.totalorder %s3089_s3, %s2308_s12  ;;  %p2315_p12 = scmp.lt.u32.totalorder %s2308_s12, %s3089_s3 }
  0x30   : > { %p2311_p10 = pnand %p2309_p4, %p2656_p8 }
  0x32   : > { %p2312_p11 = pneg %p2311_p10 }
  0x34   : > { %p2317_p13 = pnand %p2315_p12, %p2312_p11 }
  0x36   : > { %2320 = shalt.err (!%p2317_p13)
}
  0x37   : > { %s2321_s18 = scalar_lea.vmem %s2644_s22, 1024  ;;  %p2329_p7 = scmp.lt.s32.totalorder %s2644_s22, %s2644_s22 }
  0x38   : > { %p2322_p0 = scmp.ne.s32.totalorder %s2644_s22, %s2321_s18  ;;  %p2330_p9 = scmp.lt.s32.totalorder %s2321_s18, %s2321_s18 }
  0x3a   : > { %p2324_p2 = pnand %p2322_p0, %p2656_p8  ;;  %p2331_p4 = por %p2330_p9, %p2329_p7 }
  0x3c   : > { %p2325_p5 = pneg %p2324_p2 }
  0x3e   : > { %p2332_p10 = pnand %p2331_p4, %p2325_p5 }
  0x40   : > { %2335 = shalt.err (!%p2332_p10)
}
  0x41   : > { %2133 = dma.hbm_to_vmem [thread:$0]  (!%p2640_p6), %s3089_s3, 1024, %s2644_s22, [#allocation9], %s2533_s24, %s2533_s24, %s2534_s26  }
  0x42   : > { %s2336_s29 = scalar_lea.hbm %s3088_s2, 1024 }
  0x43   : > { %p2337_p11 = scmp.ne.s32.totalorder %s3088_s2, %s2336_s29  ;;  %p2343_p0 = scmp.lt.u32.totalorder %s2336_s29, %s3088_s2 }
  0x45   : > { %p2339_p12 = pnand %p2337_p11, %p2656_p8 }
  0x47   : > { %p2340_p13 = pneg %p2339_p12 }
  0x49   : > { %p2345_p2 = pnand %p2343_p0, %p2340_p13 }
  0x4b   : > { %2348 = shalt.err (!%p2345_p2)
}
  0x4c   : > { %s2349_s22 = scalar_lea.vmem %s2646_s25, 1024  ;;  %p2357_p4 = scmp.lt.s32.totalorder %s2646_s25, %s2646_s25 }
  0x4d   : > { %p2350_p5 = scmp.ne.s32.totalorder %s2646_s25, %s2349_s22  ;;  %p2358_p10 = scmp.lt.s32.totalorder %s2349_s22, %s2349_s22 }
  0x4f   : > { %p2352_p7 = pnand %p2350_p5, %p2656_p8  ;;  %p2359_p11 = por %p2358_p10, %p2357_p4 }
  0x51   : > { %p2353_p9 = pneg %p2352_p7 }
  0x53   : > { %p2360_p12 = pnand %p2359_p11, %p2353_p9 }
  0x55   : > { %2363 = shalt.err (!%p2360_p12)
}
  0x56   : > { %2130 = dma.hbm_to_vmem [thread:$0]  (!%p2640_p6), %s3088_s2, 1024, %s2646_s25, [#allocation6], %s2533_s24, %s2533_s24, %s2534_s26  }
  0x57   : > { %s2535_s10 = smov [#allocation10]   ;;  %s2536_s28 = smov [#allocation11]  }
  0x58   : > { %s326_s27 = sshll.u32 %s2535_s10, 4  ;;  %s339_s29 = sshll.u32 %s2536_s28, 4  ;;  %s327_s27 = int_to_ptr.vmem [resolvable:$true] %s326_s27  ;;  %s340_s29 = int_to_ptr.vmem [resolvable:$true] %s339_s29 }
  0x59   : > { %s2364_s17 = scalar_lea.hbm %s3090_s4, 1024 }
  0x5a   : > { %p2365_p13 = scmp.ne.s32.totalorder %s3090_s4, %s2364_s17  ;;  %p2371_p5 = scmp.lt.u32.totalorder %s2364_s17, %s3090_s4 }
  0x5c   : > { %p2367_p0 = pnand %p2365_p13, %p2656_p8 }
  0x5e   : > { %p2368_p2 = pneg %p2367_p0 }
  0x60   : > { %p2373_p7 = pnand %p2371_p5, %p2368_p2 }
  0x62   : > { %2376 = shalt.err (!%p2373_p7)
}
  0x63   : > { %s2377_s25 = scalar_lea.vmem %s327_s27, 1024  ;;  %p2385_p11 = scmp.lt.s32.totalorder %s327_s27, %s327_s27 }
  0x64   : > { %p2378_p9 = scmp.ne.s32.totalorder %s327_s27, %s2377_s25  ;;  %p2386_p12 = scmp.lt.s32.totalorder %s2377_s25, %s2377_s25 }
  0x66   : > { %p2380_p4 = pnand %p2378_p9, %p2656_p8  ;;  %p2387_p1 = por %p2386_p12, %p2385_p11 }
  0x68   : > { %p2381_p10 = pneg %p2380_p4 }
  0x6a   : > { %p2388_p3 = pnand %p2387_p1, %p2381_p10 }
  0x6c   : > { %2391 = shalt.err (!%p2388_p3)
}
  0x6d   : > { %2136 = dma.hbm_to_vmem [thread:$0]  (!%p2640_p6), %s3090_s4, 1024, %s327_s27, [#allocation9], %s2533_s24, %s2533_s24, %s2534_s26  }
  0x6e   : > { %s2392_s30 = scalar_lea.hbm %s3091_s5, 1024 }
  0x6f   : > { %p2393_p1 = scmp.ne.s32.totalorder %s3091_s5, %s2392_s30  ;;  %p2399_p0 = scmp.lt.u32.totalorder %s2392_s30, %s3091_s5 }
  0x71   : > { %p2395_p3 = pnand %p2393_p1, %p2656_p8 }
  0x73   : > { %p2396_p13 = pneg %p2395_p3 }
  0x75   : > { %p2401_p2 = pnand %p2399_p0, %p2396_p13 }
  0x77   : > { %2404 = shalt.err (!%p2401_p2)
}
  0x78   : > { %s2405_s18 = scalar_lea.vmem %s340_s29, 1024  ;;  %p2413_p4 = scmp.lt.s32.totalorder %s340_s29, %s340_s29 }
  0x79   : > { %p2406_p5 = scmp.ne.s32.totalorder %s340_s29, %s2405_s18  ;;  %p2414_p10 = scmp.lt.s32.totalorder %s2405_s18, %s2405_s18 }
  0x7b   : > { %p2408_p7 = pnand %p2406_p5, %p2656_p8  ;;  %p2415_p11 = por %p2414_p10, %p2413_p4 }
  0x7d   : > { %p2409_p9 = pneg %p2408_p7 }
  0x7f   : > { %p2416_p12 = pnand %p2415_p11, %p2409_p9 }
  0x81   : > { %2419 = shalt.err (!%p2416_p12)
}
  0x82   : > { %2139 = dma.hbm_to_vmem [thread:$0]  (!%p2640_p6), %s3091_s5, 1024, %s340_s29, [#allocation12], %s2533_s24, %s2533_s24, %s2534_s26  }
  0x83   : > { %s1780_s23 = sadd.s32 4294967294, %s2528_s16   ;;  %s2776_s11 = sadd.s32 1, %s2528_s16  }
  0x84   : > { %s36_s1 = sadd.s32 1, %s2524_s15  ;;  %s33_s9 = ssub.s32 %s2528_s16, %s2776_s11 }
  0x85   : > { %p43_p8 = scmp.ne.s32.totalorder %s2524_s15, %s2520_s14  ;;  %p34_p1 = scmp.eq.s32.totalorder %s33_s9, 0 }
  0x86   : > { %p44_p3 = scmp.eq.s32.totalorder %s2528_s16, 0  ;;  %p49_p13 = scmp.ne.s32.totalorder %s2520_s14, %s2516_s13 }
  0x87   : > { %p262_p0 = scmp.eq.s32.totalorder %s2624_s19, 1  ;;  %p3108_p5 = scmp.eq.s32.totalorder %s2624_s19, 0 }
  0x88   : > { %s2788_s10 = scalar_select %p34_p1, %s2524_s15, %s36_s1  }
  0x89   : > { %p45_p2 = por %p44_p3, %p43_p8  ;;  %p2792_p7 = por %p3108_p5, %p49_p13 }
  0x8a   : > { %p2796_p6 = por %p262_p0, %p43_p8  ;;  %p268_p9 = scmp.eq.s32.totalorder %s1780_s23, 1 }
  0x8b   : > { %p2153_p4 = scmp.lt.s32.totalorder %s2528_s16, 2  ;;  %s365_s26 = sand.u32 1, %s2524_s15  }
  0x8c   : > { %s3110_s24 = scalar_select %p2796_p6, 1, 0 }
  0x8d   : > { %p2802_p10 = por %p268_p9, %p49_p13  ;;  %s1788_s30 = sshll.u32 %s365_s26, 4 }
  0x8e   : > { %s1860_s12 = sshll.u32 %s2528_s16, 8  ;;  %s369_s18 = scalar_lea.vmem [#allocation2], %s1788_s30 }
  0x8f   : > { %s3111_s29 = scalar_select %p2802_p10, 1, 0 }
  0x90   : > { %s2810_s22 = scalar_lea.hbm %s3086_s0, %s1860_s12  ;;  %s376_s27 = sshll.u32 %s369_s18, 4  ;;  %s2816_s27 = int_to_ptr.vmem [resolvable:$true] %s376_s27 }
  0x91   : > { %p2812_p11 = pnand %p2153_p4, %p45_p2  ;;  %s2818_s23 = scalar_lea.sflag [#allocation3], %s365_s26 }
  0x92   : > { %s2420_s1 = scalar_lea.hbm %s2810_s22, 256  ;;  %s2425_s12 = scalar_lea.hbm %s3086_s0, 512 }
  0x93   : > { %p2421_p12 = scmp.ne.s32.totalorder %s2810_s22, %s2420_s1  ;;  %p2422_p8 = pneg %p2812_p11 }
  0x94   : > { %p2426_p13 = scmp.lt.u32.totalorder %s2810_s22, %s3086_s0  ;;  %p2427_p0 = scmp.lt.u32.totalorder %s2425_s12, %s2420_s1 }
  0x95   : > { %p2423_p1 = pnand %p2422_p8, %p2421_p12  ;;  %p2429_p5 = scmp.lt.u32.totalorder %s2420_s1, %s2810_s22 }
  0x96   : > { %p2428_p2 = por %p2427_p0, %p2426_p13 }
  0x97   : > { %p2424_p3 = pneg %p2423_p1 }
  0x98   : > { %p2430_p9 = por %p2429_p5, %p2428_p2 }
  0x9a   : > { %p2431_p4 = pnand %p2430_p9, %p2424_p3 }
  0x9c   : > { %2434 = shalt.err (!%p2431_p4)
}
  0x9d   : > { %s2435_s26 = scalar_lea.vmem %s2816_s27, 256  ;;  %s2537_s18 = smov [#allocation2]  }
  0x9e   : > { %p2436_p12 = scmp.ne.s32.totalorder %s2816_s27, %s2435_s26  ;;  %s2440_s9 = sshll.u32 %s2537_s18, 4  ;;  %s2441_s9 = int_to_ptr.vmem [resolvable:$false] %s2440_s9 }
  0x9f   : > { %s2442_s30 = scalar_lea.vmem %s2441_s9, 512  ;;  %p2443_p6 = scmp.lt.s32.totalorder %s2816_s27, %s2441_s9 }
  0xa0   : > { %p2438_p1 = pnand %p2436_p12, %p2422_p8  ;;  %p2444_p13 = scmp.lt.s32.totalorder %s2442_s30, %s2435_s26 }
  0xa2   : > { %p2439_p10 = pneg %p2438_p1  ;;  %p2445_p0 = por %p2444_p13, %p2443_p6 }
  0xa4   : > { %p2446_p2 = pnand %p2445_p0, %p2439_p10 }
  0xa6   : > { %2449 = shalt.err (!%p2446_p2)
}
  0xa7   : > { %s2538_s1 = smov 128   ;;  %s2539_s12 = smov 8  }
  0xa8   : > { %2143 = dma.hbm_to_vmem [thread:$0]  (!%p2812_p11), %s2810_s22, 256, %s2816_s27, %s2818_s23, %s2538_s1, %s2538_s1, %s2539_s12  }
  0xa9   : > { %p3113_p8 = scmp.ne.s32.totalorder %s3104_s20, 0 }
  0xaa   : > { %s2849_s17 = sand.u32 (!%p3113_p8), 1, %s2520_s14  }
  0xab   : > { %388 = sbr.rel (%p3113_p8) target bundleno = 3166 (0xc5e), region = 60  ;;  %s1792_s21 = sshll.u32 (!%p3113_p8), %s2849_s17, 4 }
  0xac   : > { %s391_s26 = scalar_lea.sflag (!%p3113_p8), [#allocation3], %s2849_s17  ;;  %s2855_s18 = scalar_lea.vmem (!%p3113_p8), [#allocation2], %s1792_s21 }
  0xb2   : > { %2495 = dma.done.wait (%p2792_p7), %s391_s26, 256  }
  0xb3   : > { %2497 = vsyncadd (%p2792_p7), %s391_s26, 4294967040  ;;  %p3114_p6 = scmp.eq.s32.totalorder %s2624_s19, 0 }
  0xb5   : > { %2499 = dma.done.wait (%p3114_p6), [#allocation6], 2048   ;;  %p3115_p10 = pmov %p3114_p6 }
  0xb6   : > { %p3116_p11 = pmov %p3114_p6 }
  0xb7   : > { %2501 = vsyncadd (%p3115_p10), [#allocation6], 4294965248 }
  0xb8   : > { %2503 = dma.done.wait (%p3116_p11), [#allocation9], 2048   ;;  %p3117_p3 = pmov %p3114_p6 }
  0xba   : > { %2505 = vsyncadd (%p3117_p3), [#allocation9], 4294965248  ;;  %p3118_p5 = pmov %p3117_p3 }
  0xbb   : > { %p3119_p9 = pmov %p3117_p3 }
  0xbc   : > { %2507 = dma.done.wait (%p3118_p5), [#allocation12], 1024  }
  0xbd   : > { %2509 = vsyncadd (%p3119_p9), [#allocation12], 4294966272  ;;  %v2540_v0 = vmov 0.0   ;;  %vm2541_vm0 = vmmov 0   ;;  %v2208_v1 = vld [vmem:[#allocation7] sm:$0xff]   ;;  %v2209_v2 = vld [vmem:[#allocation7 + $0x8] sm:$0xff]  }
  0xbe   : > { %1946 = vmatprep.subr.bf16.mxu1 %v2540_v0  ;;  %1926 = vmatprep.subr.bf16.mxu0 %v2540_v0  ;;  %v2210_v3 = vld [vmem:[#allocation5] sm:$0xff]   ;;  %v2212_v4 = vld [vmem:[#allocation5 + $0x8] sm:$0xff]   ;;  %v2211_v5 = vld [vmem:[#allocation7 + $0x10] sm:$0xff]   ;;  %vm803_vm1 = vcmask 261120   ;;  %vm851_vm2 = vcmask 130048   ;;  %s2542_s25 = smov 96  }
  0xbf   : > { %1962 = vmatprep.mubr.msk.bf16.mxu1 %vm2541_vm0, %v2540_v0  ;;  %1942 = vmatprep.mubr.msk.bf16.mxu0 %vm2541_vm0, %v2540_v0  ;;  %v2214_v6 = vld [vmem:[#allocation5 + $0x10] sm:$0xff]   ;;  %v2213_v7 = vld [vmem:[#allocation7 + $0x18] sm:$0xff]   ;;  %v2215_v9 = vld [vmem:[#allocation7 + $0x20] sm:$0xff]   ;;  %s2543_s30 = smov 64   ;;  %s2544_s1 = smov 32  }
  0xc0   : > { %1947 = vmatpush3.bf16.msra.mxu1 %v2208_v1  ;;  %1927 = vmatpush3.bf16.msra.mxu0 %v2210_v3  ;;  %v2216_v8 = vld [vmem:[#allocation5 + $0x18] sm:$0xff]   ;;  %v2217_v10 = vld [vmem:[#allocation7 + $0x28] sm:$0xff]   ;;  %v2218_v11 = vld [vmem:[#allocation5 + $0x20] sm:$0xff]   ;;  %s450_s20 = scalar_lea.vmem [#allocation13], %s1792_s21  ;;  %s1861_s22 = sshll.u32 %s2624_s19, 8 }
  0xc1   : > { %1948 = vmatprep.subr.bf16.mxu1 %v2540_v0  ;;  %1928 = vmatprep.subr.bf16.mxu0 %v2540_v0  ;;  %v2220_v12 = vld [vmem:[#allocation5 + $0x28] sm:$0xff]   ;;  %v2219_v13 = vld [vmem:[#allocation7 + $0x30] sm:$0xff]   ;;  %v2221_v15 = vld [vmem:[#allocation7 + $0x38] sm:$0xff]   ;;  %s1659_s28 = sshll.u32 %s450_s20, 4  ;;  %s3121_s23 = sld [smem:[#allocation21_spill]]  ;;  %s3037_s28 = int_to_ptr.vmem [resolvable:$true] %s1659_s28 }
  0xc2   : > { %v2222_v14 = vld [vmem:[#allocation5 + $0x30] sm:$0xff]   ;;  %v2894_v17 = vld [vmem:[%s2855_s18 + $0x8] sm:$0xff]  ;;  %v1808_v20 = vld [vmem:[%s3093_s7] ss:$0 sm:$0xff]  ;;  %s1646_s21 = scalar_lea.sflag [#allocation4], %s2849_s17  ;;  %s2450_s19 = scalar_lea.vmem %s3037_s28, 256 }
  0xc3   : > { %v2891_v16 = vld [vmem:[%s2855_s18] sm:$0xff]  ;;  %v2223_v18 = vld [vmem:[#allocation5 + $0x38] sm:$0xff]   ;;  %v2225_v38 = vld [vmem:[#allocation8 + $0x8] sm:$0xff]   ;;  %s3120_s18 = sld [smem:[#allocation20_spill]]  ;;  %p2451_p7 = scmp.ne.s32.totalorder %s3037_s28, %s2450_s19 }
  0xc4   : > { %1949 = vmatpush3.bf16.msra.mxu1 %v2209_v2  ;;  %1929 = vmatpush3.bf16.msra.mxu0 %v2212_v4  ;;  %v454_v19 = vpack.c.bf16 %v2894_v17, %v2891_v16  ;;  %v1799_v22 = vld [vmem:[%s3092_s6] ss:$0 sm:$0xff]  ;;  %v2226_v39 = vld [vmem:[#allocation8 + $0x10] sm:$0xff]   ;;  %v2227_v40 = vld [vmem:[#allocation8 + $0x18] sm:$0xff]   ;;  %p3122_p4 = scmp.ne.s32.totalorder %s3110_s24, 0 }
  0xc5   : > { %1950 = vmatprep.subr.bf16.mxu1 %v2540_v0  ;;  %1930 = vmatprep.subr.bf16.mxu0 %v2540_v0  ;;  %v2224_v37 = vld [vmem:[#allocation8] sm:$0xff]   ;;  %v2229_v42 = vld [vmem:[#allocation8 + $0x28] sm:$0xff]   ;;  %v2230_v43 = vld [vmem:[#allocation8 + $0x30] sm:$0xff]  }
  0xc6   : > { %v2228_v41 = vld [vmem:[#allocation8 + $0x20] sm:$0xff]   ;;  %v2231_v44 = vld [vmem:[#allocation8 + $0x38] sm:$0xff]   ;;  %p2452_p12 = pnand %p2451_p7, %p3122_p4 }
  0xc7   : > { %v1817_v1 = vld [vmem:[%s3094_s8] ss:$0 sm:$0xff]  ;;  %s3042_s9 = scalar_lea.hbm %s3121_s23, %s1861_s22 }
  0xc8   : > { %1951 = vmatpush3.bf16.msra.mxu1 %v2211_v5  ;;  %1931 = vmatpush3.bf16.msra.mxu0 %v2214_v6  ;;  %p2453_p1 = pneg %p2452_p12 }
  0xc9   : > { %1952 = vmatprep.subr.bf16.mxu1 %v2540_v0  ;;  %1932 = vmatprep.subr.bf16.mxu0 %v2540_v0 }
  0xcc   : > { %1953 = vmatpush3.bf16.msra.mxu1 %v2213_v7  ;;  %1933 = vmatpush3.bf16.msra.mxu0 %v2216_v8 }
  0xcd   : > { %1954 = vmatprep.subr.bf16.mxu1 %v2540_v0  ;;  %1934 = vmatprep.subr.bf16.mxu0 %v2540_v0 }
  0xd0   : > { %1955 = vmatpush3.bf16.msra.mxu1 %v2215_v9  ;;  %1935 = vmatpush3.bf16.msra.mxu0 %v2218_v11 }
  0xd1   : > { %1956 = vmatprep.subr.bf16.mxu1 %v2540_v0  ;;  %1936 = vmatprep.subr.bf16.mxu0 %v2540_v0 }
  0xd4   : > { %1957 = vmatpush3.bf16.msra.mxu1 %v2217_v10  ;;  %1937 = vmatpush3.bf16.msra.mxu0 %v2220_v12  ;;  %v2232_v12 = vld [vmem:[#allocation10] sm:$0xff]  }
  0xd5   : > { %1958 = vmatprep.subr.bf16.mxu1 %v2540_v0  ;;  %1938 = vmatprep.subr.bf16.mxu0 %v2540_v0 }
  0xd8   : > { %1959 = vmatpush3.bf16.msra.mxu1 %v2219_v13  ;;  %1939 = vmatpush3.bf16.msra.mxu0 %v2222_v14  ;;  %v2233_v14 = vld [vmem:[#allocation10 + $0x8] sm:$0xff]  }
  0xd9   : > { %1960 = vmatprep.subr.bf16.mxu1 %v2540_v0  ;;  %1940 = vmatprep.subr.bf16.mxu0 %v2540_v0 }
  0xdc   : > { %1961 = vmatpush3.bf16.msra.mxu1 %v2221_v15  ;;  %1941 = vmatpush3.bf16.msra.mxu0 %v2223_v18 }
  0xdd   : > { %1986 = vmatprep.subr.bf16.mxu1 %v2540_v0  ;;  %1966 = vmatprep.subr.bf16.mxu0 %v2540_v0 }
  0xdf   : > { %1963 = vmatmul.mubr.bf16.vlgmr.msra.gmra.mrb[0].mxu1 %v454_v19  ;;  %1943 = vmatmul.mubr.bf16.vlgmr.msra.gmra.mrb[0].mxu0 %v454_v19 }
  0xe0   : > { %1988 = vmatprep.mubr.msk.bf16.mxu1 %vm2541_vm0, %v2540_v0  ;;  %1982 = vmatprep.mubr.msk.bf16.mxu0 %vm2541_vm0, %v2540_v0 }
  0xe1   : > { %1967 = vmatpush3.bf16.msra.mxu0 %v2224_v37 }
  0xe2   : > { %1968 = vmatprep.subr.bf16.mxu0 %v2540_v0 }
  0xe5   : > { %1969 = vmatpush3.bf16.msra.mxu0 %v2225_v38 }
  0xe6   : > { %1970 = vmatprep.subr.bf16.mxu0 %v2540_v0 }
  0xe9   : > { %1971 = vmatpush3.bf16.msra.mxu0 %v2226_v39 }
  0xea   : > { %1972 = vmatprep.subr.bf16.mxu0 %v2540_v0 }
  0xed   : > { %1973 = vmatpush3.bf16.msra.mxu0 %v2227_v40 }
  0xee   : > { %1974 = vmatprep.subr.bf16.mxu0 %v2540_v0 }
  0xf1   : > { %1975 = vmatpush3.bf16.msra.mxu0 %v2228_v41 }
  0xf2   : > { %1976 = vmatprep.subr.bf16.mxu0 %v2540_v0 }
  0xf5   : > { %1977 = vmatpush3.bf16.msra.mxu0 %v2229_v42 }
  0xf6   : > { %1978 = vmatprep.subr.bf16.mxu0 %v2540_v0 }
  0xf9   : > { %1979 = vmatpush3.bf16.msra.mxu0 %v2230_v43 }
  0xfa   : > { %1980 = vmatprep.subr.bf16.mxu0 %v2540_v0 }
  0xfd   : > { %1981 = vmatpush3.bf16.msra.mxu0 %v2231_v44 }
  0xfe   : > { %2046 = vmatprep.subr.bf16.mxu0 %v2540_v0 }
 0x100   : > { %1983 = vmatmul.mubr.bf16.vlgmr.msra.gmra.mrb[4].mxu0 %v454_v19 }
 0x101   : > { %2048 = vmatprep.mubr.msk.bf16.mxu0 %vm2541_vm0, %v2540_v0 }
 0x1b2   : > { %v672_v21 = vpop.f32.mrb[0].mxu1  ;;  %v560_v25 = vpop.f32.mrb[0].mxu0 }
 0x1b3   : > { %v1964_v23 = vpop.f32.mrb[1].mxu1  ;;  %v673_v26 = vadd.f32 %v1808_v20, %v672_v21  ;;  %v561_v29 = vadd.f32 %v1799_v22, %v560_v25  ;;  %v1944_v30 = vpop.f32.mrb[1].mxu0 }
 0x1b4   : > { %v675_v24 = vpop.f32.mrb[2].mxu1  ;;  %v563_v31 = vpop.f32.mrb[2].mxu0 }
 0x1b5   : > { %v676_v27 = vadd.f32 %v1808_v20, %v675_v24  ;;  %v1965_v28 = vpop.f32.mrb[3].mxu1  ;;  %v564_v33 = vadd.f32 %v1799_v22, %v563_v31  ;;  %v1945_v34 = vpop.f32.mrb[3].mxu0 }
 0x1b7   : > { %v2913_v32 = vpack.c.bf16 %v676_v27, %v673_v26  ;;  %v2915_v35 = vpack.c.bf16 %v564_v33, %v561_v29 }
 0x1b9   : > { %v808_v36 = vsel %vm803_vm1, %v2913_v32, 0 }
 0x1ba   : > { %1987 = vmatpush3.bf16.xpose.msra.mxu1 %v808_v36 }
 0x1bb   : > { %1992 = vmatprep.subr.bf16.mxu1 %v2540_v0 }
 0x1c1   : > { %1989 = vmatmul.mubr.msk.bf16.vlgmr.msra.gmra.mrb[4].mxu1 %vm803_vm1, %v2915_v35 }
 0x1c2   : > { %1994 = vmatprep.mubr.msk.bf16.mxu1 %vm2541_vm0, %v2540_v0 }
 0x1d3   : > { %v784_v61 = vpop.f32.mrb[4].mxu0 }
 0x1d4   : > { %v1984_v62 = vpop.f32.mrb[5].mxu0  ;;  %v785_v3 = vadd.f32 %v1817_v1, %v784_v61 }
 0x1d5   : > { %v787_v63 = vpop.f32.mrb[6].mxu0 }
 0x1d6   : > { %v1985_v2 = vpop.f32.mrb[7].mxu0  ;;  %v788_v4 = vadd.f32 %v1817_v1, %v787_v63 }
 0x1d8   : > { %v2945_v5 = vpack.c.bf16 %v788_v4, %v785_v3 }
 0x1da   : > { %1993 = vmatpush3.bf16.msra.mxu1 %v2945_v5 }
 0x1db   : > { %1998 = vmatprep.subr.bf16.mxu1 %v2540_v0 }
 0x294   : > { %v844_v45 = vpop.f32.mrb[4].mxu1 }
 0x295   : > { %v1990_v46 = vpop.f32.mrb[5].mxu1  ;;  %v852_v47 = vsel %vm851_vm2, %v844_v45, -inf }
 0x296   : > { %853 = vmax.xlane.f32.xlu0 %v852_v47  ;;  %v847_v48 = vpop.f32.mrb[6].mxu1 }
 0x297   : > { %v1991_v49 = vpop.f32.mrb[7].mxu1  ;;  %v855_v50 = vsel %vm851_vm2, %v847_v48, -inf }
 0x29a   : > { %856 = vmax.xlane.f32.xlu0 %v855_v50 }
 0x2b0   : > { %986 = vrot.lane.b32.xlu0 %v2913_v32, %s2542_s25 }
 0x323   : > { %v854_v51 = vpop.xlane.xlu0 %853 }
 0x324   : > { %v858_v52 = vsub.f32 %v844_v45, %v854_v51 }
 0x326   : > { %v860_v53 = vmul.f32 1.442695, %v858_v52 }
 0x327   : > { %v857_v54 = vpop.xlane.xlu0 %856 }
 0x328   : > { %2248 = vpow2.f32 %v860_v53  ;;  %v859_v55 = vsub.f32 %v847_v48, %v857_v54  ;;  %v2234_v53 = vld [vmem:[#allocation10 + $0x10] sm:$0xff]   ;;  %v2235_v54 = vld [vmem:[#allocation10 + $0x18] sm:$0xff]  }
 0x32a   : > { %v862_v56 = vmul.f32 1.442695, %v859_v55 }
 0x32b   : > { %v987_v19 = vpop.permute.xlu0 %986 }
 0x32c   : > { %2250 = vpow2.f32 %v862_v56  ;;  %v992_v23 = vsel %vm803_vm1, %v987_v19, 0 }
 0x332   : > { %v2249_v57 = vpop.eup %2248 }
 0x333   : > { %v864_v58 = vsel %vm851_vm2, %v2249_v57, 0.0 }
 0x334   : > { %865 = vadd.xlane.f32.xlu1 %v864_v58 }
 0x336   : > { %v2251_v59 = vpop.eup %2250 }
 0x337   : > { %v867_v60 = vsel %vm851_vm2, %v2251_v59, 0.0 }
 0x338   : > { %868 = vadd.xlane.f32.xlu1 %v867_v60 }
 0x349   : > { %983 = vrot.lane.b32.xlu1 %v2915_v35, %s2542_s25 }
 0x3c1   : > { %v866_v6 = vpop.xlane.xlu1 %865 }
 0x3c2   : > { %2252 = vrcp.f32 %v866_v6 }
 0x3c5   : > { %v869_v7 = vpop.xlane.xlu1 %868 }
 0x3c6   : > { %2254 = vrcp.f32 %v869_v7 }
 0x3c9   : > { %v984_v24 = vpop.permute.xlu1 %983 }
 0x3cc   : > { %v2253_v8 = vpop.eup %2252 }
 0x3cd   : > { %v872_v10 = vmul.f32 %v2253_v8, %v2249_v57 }
 0x3d0   : > { %v2255_v9 = vpop.eup %2254 }
 0x3d1   : > { %v873_v11 = vmul.f32 %v2255_v9, %v2251_v59 }
 0x3d3   : > { %v874_v13 = vpack.c.bf16 %v873_v11, %v872_v10 }
 0x3d5   : > { %1995 = vmatmul.mubr.msk.bf16.vlgmr.msra.gmra.mrb[8].mxu1 %vm851_vm2, %v874_v13 }
 0x3d6   : > { %1999 = vmatpush3.bf16.msra.mxu1 %v2232_v12  ;;  %2002 = vmatprep.mubr.msk.bf16.mxu1 %vm2541_vm0, %v2540_v0 }
 0x3d7   : > { %2000 = vmatprep.subr.bf16.mxu1 %v2540_v0 }
 0x3da   : > { %2001 = vmatpush3.bf16.msra.mxu1 %v2233_v14 }
 0x3db   : > { %2006 = vmatprep.subr.bf16.mxu1 %v2540_v0 }
 0x4a8   : > { %v912_v15 = vpop.f32.mrb[8].mxu1 }
 0x4a9   : > { %v1996_v18 = vpop.f32.mrb[9].mxu1 }
 0x4aa   : > { %v915_v20 = vpop.f32.mrb[10].mxu1 }
 0x4ab   : > { %v919_v21 = vpack.c.bf16 %v915_v20, %v912_v15  ;;  %v1997_v22 = vpop.f32.mrb[11].mxu1 }
 0x4ad   : > { %2003 = vmatmul.mubr.msk.bf16.vlgmr.msra.gmra.mrb[12].mxu1 %vm803_vm1, %v919_v21 }
 0x4ae   : > { %2007 = vmatpush3.bf16.xpose.msra.mxu1 %v992_v23  ;;  %2008 = vmatprep.mubr.msk.bf16.mxu1 %vm2541_vm0, %v2540_v0 }
 0x4af   : > { %2012 = vmatprep.subr.bf16.mxu1 %v2540_v0 }
 0x4b5   : > { %2009 = vmatmul.mubr.msk.bf16.vlgmr.msra.gmra.mrb[16].mxu1 %vm803_vm1, %v984_v24 }
 0x4b6   : > { %2014 = vmatprep.mubr.msk.bf16.mxu1 %vm2541_vm0, %v2540_v0 }
 0x588   : > { %v1028_v25 = vpop.f32.mrb[16].mxu1 }
 0x589   : > { %v2010_v26 = vpop.f32.mrb[17].mxu1  ;;  %v1035_v27 = vsel %vm851_vm2, %v1028_v25, -inf }
 0x58a   : > { %1036 = vmax.xlane.f32.xlu1 %v1035_v27  ;;  %v1031_v28 = vpop.f32.mrb[18].mxu1 }
 0x58b   : > { %v2011_v29 = vpop.f32.mrb[19].mxu1  ;;  %v1038_v30 = vsel %vm851_vm2, %v1031_v28, -inf }
 0x58c   : > { %1039 = vmax.xlane.f32.xlu0 %v1038_v30 }
 0x617   : > { %v1037_v31 = vpop.xlane.xlu1 %1036 }
 0x618   : > { %v1041_v33 = vsub.f32 %v1028_v25, %v1037_v31 }
 0x619   : > { %v1040_v34 = vpop.xlane.xlu0 %1039 }
 0x61a   : > { %v1043_v36 = vmul.f32 1.442695, %v1041_v33  ;;  %v1042_v37 = vsub.f32 %v1031_v28, %v1040_v34 }
 0x61c   : > { %2256 = vpow2.f32 %v1043_v36  ;;  %v1045_v38 = vmul.f32 1.442695, %v1042_v37 }
 0x61e   : > { %2258 = vpow2.f32 %v1045_v38 }
 0x626   : > { %v2257_v39 = vpop.eup %2256 }
 0x627   : > { %v1047_v40 = vsel %vm851_vm2, %v2257_v39, 0.0 }
 0x628   : > { %v2259_v41 = vpop.eup %2258  ;;  %1048 = vadd.xlane.f32.xlu0 %v1047_v40 }
 0x629   : > { %v1050_v42 = vsel %vm851_vm2, %v2259_v41, 0.0 }
 0x62a   : > { %1051 = vadd.xlane.f32.xlu1 %v1050_v42 }
 0x63b   : > { %1171 = vrot.lane.b32.xlu1 %v2913_v32, %s2543_s30 }
 0x63e   : > { %1059 = vrot.lane.b32.xlu0 %v2945_v5, %s2542_s25 }
 0x63f   : > { %1169 = vrot.lane.b32.xlu1 %v2915_v35, %s2543_s30 }
 0x642   : > { %1353 = vrot.lane.b32.xlu0 %v2915_v35, %s2544_s1 }
 0x643   : > { %1355 = vrot.lane.b32.xlu1 %v2913_v32, %s2544_s1 }
 0x6b5   : > { %v1049_v43 = vpop.xlane.xlu0 %1048 }
 0x6b6   : > { %2260 = vrcp.f32 %v1049_v43 }
 0x6b7   : > { %v1052_v44 = vpop.xlane.xlu1 %1051 }
 0x6b8   : > { %2262 = vrcp.f32 %v1052_v44 }
 0x6b9   : > { %v1060_v45 = vpop.permute.xlu0 %1059 }
 0x6ba   : > { %2013 = vmatpush3.bf16.msra.mxu1 %v1060_v45 }
 0x6bb   : > { %v1172_v46 = vpop.permute.xlu1 %1171  ;;  %2018 = vmatprep.subr.bf16.mxu1 %v2540_v0 }
 0x6bc   : > { %v1177_v61 = vsel %vm803_vm1, %v1172_v46, 0  ;;  %v2236_v46 = vld [vmem:[#allocation10 + $0x20] sm:$0xff]  }
 0x6bd   : > { %v1354_v55 = vpop.permute.xlu0 %1353 }
 0x6bf   : > { %v1170_v47 = vpop.permute.xlu1 %1169 }
 0x6c0   : > { %v2261_v48 = vpop.eup %2260 }
 0x6c1   : > { %v1055_v50 = vmul.f32 %v2261_v48, %v2257_v39 }
 0x6c2   : > { %v2263_v49 = vpop.eup %2262 }
 0x6c3   : > { %v1056_v51 = vmul.f32 %v2263_v49, %v2259_v41  ;;  %v1356_v52 = vpop.permute.xlu1 %1355 }
 0x6c4   : > { %v1361_v35 = vsel %vm803_vm1, %v1356_v52, 0  ;;  %v2237_v52 = vld [vmem:[#allocation10 + $0x28] sm:$0xff]  }
 0x6c5   : > { %2047 = vmatpush3.bf16.xpose.msra.mxu0 %v1361_v35  ;;  %v1057_v32 = vpack.c.bf16 %v1056_v51, %v1055_v50  ;;  %v2240_v35 = vld [vmem:[#allocation11] sm:$0xff]  }
 0x6c6   : > { %2052 = vmatprep.subr.bf16.mxu0 %v2540_v0 }
 0x6c7   : > { %2015 = vmatmul.mubr.msk.bf16.vlgmr.msra.gmra.mrb[20].mxu1 %vm851_vm2, %v1057_v32  ;;  %v2242_v32 = vld [vmem:[#allocation11 + $0x10] sm:$0xff]  }
 0x6c8   : > { %2019 = vmatpush3.bf16.msra.mxu1 %v2234_v53  ;;  %2022 = vmatprep.mubr.msk.bf16.mxu1 %vm2541_vm0, %v2540_v0  ;;  %v2241_v53 = vld [vmem:[#allocation11 + $0x8] sm:$0xff]  }
 0x6c9   : > { %2020 = vmatprep.subr.bf16.mxu1 %v2540_v0 }
 0x6cc   : > { %2049 = vmatmul.mubr.msk.bf16.vlgmr.msra.gmra.mrb[8].mxu0 %vm803_vm1, %v1354_v55  ;;  %2021 = vmatpush3.bf16.msra.mxu1 %v2235_v54  ;;  %v2243_v54 = vld [vmem:[#allocation11 + $0x18] sm:$0xff]   ;;  %v2244_v55 = vld [vmem:[#allocation11 + $0x20] sm:$0xff]  }
 0x6cd   : > { %2026 = vmatprep.subr.bf16.mxu1 %v2540_v0  ;;  %2054 = vmatprep.mubr.msk.bf16.mxu0 %vm2541_vm0, %v2540_v0 }
 0x79a   : > { %v1099_v56 = vpop.f32.mrb[20].mxu1 }
 0x79b   : > { %v2016_v57 = vpop.f32.mrb[21].mxu1 }
 0x79c   : > { %v1102_v58 = vpop.f32.mrb[22].mxu1 }
 0x79d   : > { %v1106_v59 = vpack.c.bf16 %v1102_v58, %v1099_v56  ;;  %v2017_v60 = vpop.f32.mrb[23].mxu1  ;;  %v2245_v56 = vld [vmem:[#allocation11 + $0x28] sm:$0xff]  }
 0x79e   : > { %v2238_v60 = vld [vmem:[#allocation10 + $0x30] sm:$0xff]  }
 0x79f   : > { %2023 = vmatmul.mubr.msk.bf16.vlgmr.msra.gmra.mrb[12].mxu1 %vm803_vm1, %v1106_v59  ;;  %v1397_v62 = vpop.f32.mrb[8].mxu0 }
 0x7a0   : > { %2027 = vmatpush3.bf16.xpose.msra.mxu1 %v1177_v61  ;;  %v2050_v63 = vpop.f32.mrb[9].mxu0  ;;  %2028 = vmatprep.mubr.msk.bf16.mxu1 %vm2541_vm0, %v2540_v0  ;;  %v1404_v10 = vsel %vm851_vm2, %v1397_v62, -inf }
 0x7a1   : > { %v1400_v1 = vpop.f32.mrb[10].mxu0  ;;  %2032 = vmatprep.subr.bf16.mxu1 %v2540_v0  ;;  %v2239_v63 = vld [vmem:[#allocation10 + $0x38] sm:$0xff]  }
 0x7a2   : > { %v2051_v2 = vpop.f32.mrb[11].mxu0  ;;  %v1407_v11 = vsel %vm851_vm2, %v1400_v1, -inf }
 0x7a7   : > { %2029 = vmatmul.mubr.msk.bf16.vlgmr.msra.gmra.mrb[24].mxu1 %vm803_vm1, %v1170_v47 }
 0x7a8   : > { %2034 = vmatprep.mubr.msk.bf16.mxu1 %vm2541_vm0, %v2540_v0 }
 0x87a   : > { %v1213_v3 = vpop.f32.mrb[24].mxu1 }
 0x87b   : > { %v2030_v4 = vpop.f32.mrb[25].mxu1  ;;  %v1220_v6 = vsel %vm851_vm2, %v1213_v3, -inf }
 0x87c   : > { %1221 = vmax.xlane.f32.xlu1 %v1220_v6  ;;  %v1216_v7 = vpop.f32.mrb[26].mxu1 }
 0x87d   : > { %v2031_v8 = vpop.f32.mrb[27].mxu1  ;;  %v1223_v9 = vsel %vm851_vm2, %v1216_v7, -inf }
 0x87e   : > { %1224 = vmax.xlane.f32.xlu0 %v1223_v9  ;;  %v2247_v8 = vld [vmem:[#allocation11 + $0x38] sm:$0xff]   ;;  %v1826_v9 = vld [vmem:[%s3120_s18] ss:$0 sm:$0xff] }
 0x882   : > { %1405 = vmax.xlane.f32.xlu0 %v1404_v10  ;;  %v798_v10 = vadd.f32 %v1826_v9, %v2891_v16 }
 0x886   : > { %1408 = vmax.xlane.f32.xlu0 %v1407_v11  ;;  %v799_v11 = vadd.f32 %v1826_v9, %v2894_v17 }
 0x909   : > { %v1222_v12 = vpop.xlane.xlu1 %1221 }
 0x90a   : > { %v1226_v13 = vsub.f32 %v1213_v3, %v1222_v12 }
 0x90b   : > { %v1225_v14 = vpop.xlane.xlu0 %1224 }
 0x90c   : > { %v1228_v15 = vmul.f32 1.442695, %v1226_v13  ;;  %v1227_v18 = vsub.f32 %v1216_v7, %v1225_v14  ;;  %v2246_v7 = vld [vmem:[#allocation11 + $0x30] sm:$0xff]  }
 0x90e   : > { %2264 = vpow2.f32 %v1228_v15  ;;  %v1230_v19 = vmul.f32 1.442695, %v1227_v18 }
 0x90f   : > { %v1406_v20 = vpop.xlane.xlu0 %1405 }
 0x910   : > { %2266 = vpow2.f32 %v1230_v19  ;;  %v1410_v21 = vsub.f32 %v1397_v62, %v1406_v20 }
 0x912   : > { %v1412_v22 = vmul.f32 1.442695, %v1410_v21 }
 0x913   : > { %v1409_v23 = vpop.xlane.xlu0 %1408 }
 0x914   : > { %2268 = vpow2.f32 %v1412_v22  ;;  %v1411_v24 = vsub.f32 %v1400_v1, %v1409_v23 }
 0x916   : > { %v1414_v25 = vmul.f32 1.442695, %v1411_v24 }
 0x918   : > { %v2265_v26 = vpop.eup %2264  ;;  %2270 = vpow2.f32 %v1414_v25 }
 0x919   : > { %v1232_v27 = vsel %vm851_vm2, %v2265_v26, 0.0 }
 0x91a   : > { %v2267_v28 = vpop.eup %2266  ;;  %1233 = vadd.xlane.f32.xlu1 %v1232_v27 }
 0x91b   : > { %v1235_v29 = vsel %vm851_vm2, %v2267_v28, 0.0 }
 0x91c   : > { %1236 = vadd.xlane.f32.xlu0 %v1235_v29 }
 0x91e   : > { %v2269_v30 = vpop.eup %2268 }
 0x91f   : > { %v1416_v31 = vsel %vm851_vm2, %v2269_v30, 0.0 }
 0x920   : > { %1417 = vadd.xlane.f32.xlu1 %v1416_v31 }
 0x922   : > { %v2271_v33 = vpop.eup %2270 }
 0x923   : > { %v1419_v34 = vsel %vm851_vm2, %v2271_v33, 0.0 }
 0x924   : > { %1420 = vadd.xlane.f32.xlu0 %v1419_v34 }
 0x931   : > { %1243 = vrot.lane.b32.xlu1 %v2945_v5, %s2543_s30  ;;  %s2545_s30 = smov [#allocation13]  }
 0x93a   : > { %1427 = vrot.lane.b32.xlu0 %v2945_v5, %s2544_s1  ;;  %s2454_s1 = sshll.u32 %s2545_s30, 4  ;;  %s2455_s1 = int_to_ptr.vmem [resolvable:$false] %s2454_s1 }
 0x93b   : > { %s2456_s12 = scalar_lea.vmem %s2455_s1, 512  ;;  %p2457_p13 = scmp.lt.s32.totalorder %s3037_s28, %s2455_s1 }
 0x93c   : > { %p2458_p0 = scmp.lt.s32.totalorder %s2456_s12, %s2450_s19 }
 0x93e   : > { %p2459_p2 = por %p2458_p0, %p2457_p13 }
 0x940   : > { %p2460_p8 = pnand %p2459_p2, %p2453_p1 }
 0x9a7   : > { %v1234_v36 = vpop.xlane.xlu1 %1233 }
 0x9a8   : > { %2272 = vrcp.f32 %v1234_v36 }
 0x9a9   : > { %v1237_v37 = vpop.xlane.xlu0 %1236 }
 0x9aa   : > { %2274 = vrcp.f32 %v1237_v37 }
 0x9ad   : > { %v1418_v38 = vpop.xlane.xlu1 %1417 }
 0x9ae   : > { %2276 = vrcp.f32 %v1418_v38 }
 0x9b1   : > { %v1244_v39 = vpop.permute.xlu1 %1243  ;;  %v1421_v40 = vpop.xlane.xlu0 %1420 }
 0x9b2   : > { %v2273_v41 = vpop.eup %2272  ;;  %2278 = vrcp.f32 %v1421_v40  ;;  %2033 = vmatpush3.bf16.msra.mxu1 %v1244_v39 }
 0x9b3   : > { %2038 = vmatprep.subr.bf16.mxu1 %v2540_v0  ;;  %v1240_v43 = vmul.f32 %v2273_v41, %v2265_v26 }
 0x9b4   : > { %v2275_v42 = vpop.eup %2274 }
 0x9b5   : > { %v1241_v44 = vmul.f32 %v2275_v42, %v2267_v28  ;;  %v1428_v45 = vpop.permute.xlu0 %1427 }
 0x9b6   : > { %2053 = vmatpush3.bf16.msra.mxu0 %v1428_v45 }
 0x9b7   : > { %v1242_v5 = vpack.c.bf16 %v1241_v44, %v1240_v43  ;;  %2066 = vmatprep.subr.bf16.mxu0 %v2540_v0 }
 0x9b8   : > { %v2277_v47 = vpop.eup %2276 }
 0x9b9   : > { %2035 = vmatmul.mubr.msk.bf16.vlgmr.msra.gmra.mrb[28].mxu1 %vm851_vm2, %v1242_v5  ;;  %v1424_v49 = vmul.f32 %v2277_v47, %v2269_v30 }
 0x9ba   : > { %2039 = vmatpush3.bf16.msra.mxu1 %v2236_v46  ;;  %2042 = vmatprep.mubr.msk.bf16.mxu1 %vm2541_vm0, %v2540_v0 }
 0x9bb   : > { %2040 = vmatprep.subr.bf16.mxu1 %v2540_v0 }
 0x9bc   : > { %v2279_v48 = vpop.eup %2278 }
 0x9bd   : > { %v1425_v50 = vmul.f32 %v2279_v48, %v2271_v33 }
 0x9be   : > { %2041 = vmatpush3.bf16.msra.mxu1 %v2237_v52 }
 0x9bf   : > { %v1426_v51 = vpack.c.bf16 %v1425_v50, %v1424_v49  ;;  %2058 = vmatprep.subr.bf16.mxu1 %v2540_v0 }
 0x9c1   : > { %2055 = vmatmul.mubr.msk.bf16.vlgmr.msra.gmra.mrb[12].mxu0 %vm851_vm2, %v1426_v51 }
 0x9c2   : > { %2082 = vmatprep.mubr.msk.bf16.mxu0 %vm2541_vm0, %v2540_v0  ;;  %2067 = vmatpush3.bf16.msra.mxu0 %v2240_v35 }
 0x9c3   : > { %2068 = vmatprep.subr.bf16.mxu0 %v2540_v0 }
 0x9c6   : > { %2069 = vmatpush3.bf16.msra.mxu0 %v2241_v53 }
 0x9c7   : > { %2070 = vmatprep.subr.bf16.mxu0 %v2540_v0 }
 0x9ca   : > { %2071 = vmatpush3.bf16.msra.mxu0 %v2242_v32 }
 0x9cb   : > { %2072 = vmatprep.subr.bf16.mxu0 %v2540_v0 }
 0x9ce   : > { %2073 = vmatpush3.bf16.msra.mxu0 %v2243_v54 }
 0x9cf   : > { %2074 = vmatprep.subr.bf16.mxu0 %v2540_v0 }
 0x9d2   : > { %2075 = vmatpush3.bf16.msra.mxu0 %v2244_v55 }
 0x9d3   : > { %2076 = vmatprep.subr.bf16.mxu0 %v2540_v0 }
 0x9d6   : > { %2077 = vmatpush3.bf16.msra.mxu0 %v2245_v56 }
 0x9d7   : > { %2078 = vmatprep.subr.bf16.mxu0 %v2540_v0 }
 0x9da   : > { %2079 = vmatpush3.bf16.msra.mxu0 %v2246_v7 }
 0x9db   : > { %2080 = vmatprep.subr.bf16.mxu0 %v2540_v0 }
 0x9de   : > { %2081 = vmatpush3.bf16.msra.mxu0 %v2247_v8 }
 0xa8c   : > { %v1283_v57 = vpop.f32.mrb[28].mxu1 }
 0xa8d   : > { %v2036_v58 = vpop.f32.mrb[29].mxu1 }
 0xa8e   : > { %v1286_v59 = vpop.f32.mrb[30].mxu1 }
 0xa8f   : > { %v1290_v61 = vpack.c.bf16 %v1286_v59, %v1283_v57  ;;  %v2037_v62 = vpop.f32.mrb[31].mxu1 }
 0xa91   : > { %2043 = vmatmul.mubr.msk.bf16.vlgmr.msra.gmra.mrb[12].mxu1 %vm803_vm1, %v1290_v61 }
 0xa92   : > { %2059 = vmatpush3.bf16.msra.mxu1 %v2238_v60  ;;  %2062 = vmatprep.mubr.msk.bf16.mxu1 %vm2541_vm0, %v2540_v0 }
 0xa93   : > { %2060 = vmatprep.subr.bf16.mxu1 %v2540_v0 }
 0xa94   : > { %v1467_v1 = vpop.f32.mrb[12].mxu0 }
 0xa95   : > { %v2056_v2 = vpop.f32.mrb[13].mxu0 }
 0xa96   : > { %v1470_v3 = vpop.f32.mrb[14].mxu0  ;;  %2061 = vmatpush3.bf16.msra.mxu1 %v2239_v63 }
 0xa97   : > { %v1474_v4 = vpack.c.bf16 %v1470_v3, %v1467_v1  ;;  %v2057_v6 = vpop.f32.mrb[15].mxu0 }
 0xa9d   : > { %2063 = vmatmul.mubr.msk.bf16.vlgmr.msra.gmra.mrb[12].mxu1 %vm803_vm1, %v1474_v4 }
 0xb70   : > { %v1528_v12 = vpop.f32.mrb[12].mxu1 }
 0xb71   : > { %v2064_v13 = vpop.f32.mrb[13].mxu1  ;;  %v2086_v15 = vadd.f32 %v1528_v12, %v798_v10 }
 0xb72   : > { %v1531_v14 = vpop.f32.mrb[14].mxu1 }
 0xb73   : > { %v2087_v18 = vadd.f32 %v1531_v14, %v799_v11  ;;  %v2065_v19 = vpop.f32.mrb[15].mxu1 }
 0xb75   : > { %v1537_v20 = vpack.c.bf16 %v2087_v18, %v2086_v15 }
 0xb77   : > { %2083 = vmatmul.mubr.bf16.vlgmr.msra.gmra.mrb[16].mxu0 %v1537_v20 }
 0xc4a   : > { %v1636_v0 = vpop.f32.mrb[16].mxu0 }
 0xc4b   : > { %v1637_v21 = vadd.f32 %v2086_v15, %v1636_v0  ;;  %v2084_v16 = vpop.f32.mrb[17].mxu0 }
 0xc4c   : > { %v1639_v17 = vpop.f32.mrb[18].mxu0 }
 0xc4d   : > { %1643 = vst [vmem:[%s450_s20] sm:$0xff] %v1637_v21  ;;  %v1640_v22 = vadd.f32 %v2087_v18, %v1639_v17  ;;  %v2085_v23 = vpop.f32.mrb[19].mxu0 }
 0xc4f   : > { %1644 = vst [vmem:[%s450_s20 + $0x8] sm:$0xff] %v1640_v22 }
 0xc50   : > { %2463 = shalt.err (!%p2460_p8)
}
 0xc51   : > { %s2464_s26 = scalar_lea.hbm %s3042_s9, 256  ;;  %s2468_s22 = scalar_lea.hbm %s3121_s23, 512 }
 0xc52   : > { %p2465_p6 = scmp.ne.s32.totalorder %s3042_s9, %s2464_s26  ;;  %p2469_p3 = scmp.lt.u32.totalorder %s3042_s9, %s3121_s23 }
 0xc53   : > { %p2470_p5 = scmp.lt.u32.totalorder %s2468_s22, %s2464_s26  ;;  %p2472_p7 = scmp.lt.u32.totalorder %s2464_s26, %s3042_s9 }
 0xc54   : > { %p2466_p10 = pnand %p2465_p6, %p3122_p4 }
 0xc55   : > { %p2471_p9 = por %p2470_p5, %p2469_p3 }
 0xc56   : > { %p2467_p11 = pneg %p2466_p10 }
 0xc57   : > { %p2473_p12 = por %p2472_p7, %p2471_p9 }
 0xc59   : > { %p2474_p1 = pnand %p2473_p12, %p2467_p11 }
 0xc5b   : > { %2477 = shalt.err (!%p2474_p1)
}
 0xc5c   : > { %s2546_s19 = smov 128   ;;  %s2547_s30 = smov 8  }
 0xc5d   : > { %2122 = dma.vmem_to_hbm [thread:$0]  (%p3122_p4), %s3037_s28, 256, %s3042_s9, %s1646_s21, %s2546_s19, %s2546_s19, %s2547_s30  }
 0xc5e PF: > { %s1674_s1 = sand.u32 1, %s2516_s13   ;;  %p3123_p13 = scmp.ne.s32.totalorder %s3111_s29, 0 }
 0xc5f   : > { %p3124_p0 = scmp.ge.s32.totalorder %s2528_s16, 2  ;;  %s1675_s12 = scalar_lea.sflag [#allocation4], %s1674_s1 }
 0xc61   : > { %p2145_p2 = pnand %p3124_p0, %p3123_p13 }
 0xc63   : > { %2511 = dma.done.wait (!%p2145_p2), %s1675_s12, 256  }
 0xc64   : > { %2513 = vsyncadd (!%p2145_p2), %s1675_s12, 4294967040  ;;  %p26_p8 = scmp.ge.s32.totalorder %s2776_s11, 4   ;;  %s3125_s13 = smov %s2520_s14 }
 0xc65   : > { %s3126_s14 = smov %s2524_s15  ;;  %s3127_s15 = smov %s2788_s10 }
 0xc66   : > { %s3128_s16 = smov %s2776_s11  ;;  %28 = sbr.rel (!%p26_p8) target bundleno = 12 (0xc), region = 125 }
 0xc6d   :  { %1680 = vsyncpa [#allocation3], 1 }
 0xc6e   :  { %1682 = vsyncpa [#allocation3 + $0x1], 1 }
 0xc6f   :  { %1683 = vsyncpa [#allocation6], 1 }
 0xc70   :  { %1684 = vsyncpa [#allocation9], 1 }
 0xc71   :  { %1685 = vsyncpa [#allocation12], 1 }
 0xc72   :  { %1686 = vsyncpa [#allocation4], 1 }
 0xc73   :  { %1688 = vsyncpa [#allocation4 + $0x1], 1 }

// kernel: tpu_custom_call.1
= control target key start
LH: loop header
LB: loop body
LE: loop exit
PB: predicated region body
PF: predicated region fallthrough
CT: control target
= control target key end

     0   :  { %s3086_s0 = inlined_call_operand.hbm [shape: f32[2,16,128], index: 0, kind: input, shape index: {}]   ;;  %s3087_s1 = inlined_call_operand.hbm [shape: bf16[128,128], index: 1, kind: input, shape index: {}]   ;;  %s3088_s2 = inlined_call_operand.hbm [shape: bf16[128,128], index: 2, kind: input, shape index: {}]   ;;  %s3089_s3 = inlined_call_operand.hbm [shape: bf16[128,128], index: 3, kind: input, shape index: {}]   ;;  %s3090_s4 = inlined_call_operand.hbm [shape: bf16[128,128], index: 4, kind: input, shape index: {}]   ;;  %s3091_s5 = inlined_call_operand.hbm [shape: bf16[128,128], index: 5, kind: input, shape index: {}]   ;;  %s3092_s6 = inlined_call_operand.vmem [shape: f32[1,128], index: 6, kind: input, shape index: {}]   ;;  %s3093_s7 = inlined_call_operand.vmem [shape: f32[1,128], index: 7, kind: input, shape index: {}]   ;;  %s3094_s8 = inlined_call_operand.vmem [shape: f32[1,128], index: 8, kind: input, shape index: {}]   ;;  %s3095_s9 = inlined_call_operand.vmem [shape: f32[1,128], index: 9, kind: input, shape index: {}]   ;;  %s3096_s10 = inlined_call_operand.hbm [shape: f32[2,16,128], index: 10, kind: output, shape index: {}]  }
   0x1   :  { %3101 = sst [smem:[#allocation19_spill]] %s3087_s1 }
   0x2   :  { %3102 = sst [smem:[#allocation20_spill]] %s3095_s9 }
   0x3   :  { %3103 = sst [smem:[#allocation21_spill]] %s3096_s10 }
   0x4   :  { %15 = vsyncpa [#allocation3], 0 }
   0x5   :  { %17 = vsyncpa [#allocation3 + $0x1], 0 }
   0x6   :  { %18 = vsyncpa [#allocation6], 0 }
   0x7   :  { %19 = vsyncpa [#allocation9], 0 }
   0x8   :  { %20 = vsyncpa [#allocation12], 0 }
   0x9   :  { %21 = vsyncpa [#allocation4], 0 }
   0xa   :  { %23 = vsyncpa [#allocation4 + $0x1], 0  ;;  %s2603_s13 = smov 0   ;;  %s2605_s14 = smov 0  }
   0xb   :  { %s2607_s15 = smov 0   ;;  %s2609_s16 = smov 0  }
   0xc LB: > { %s2530_s17 = smov [#allocation5]   ;;  %s2624_s19 = sadd.s32 4294967295, %s2528_s16   ;;  %s2528_s16 = sphi %s2609_s16, %s3128_s16   ;;  %s2524_s15 = sphi %s2607_s15, %s3127_s15   ;;  %s2520_s14 = sphi %s2605_s14, %s3126_s14   ;;  %s2516_s13 = sphi %s2603_s13, %s3125_s13  }
   0xd   : > { %s287_s18 = sshll.u32 %s2530_s17, 4  ;;  %p1781_p0 = scmp.ge.s32.totalorder %s2528_s16, 1  ;;  %s2629_s18 = int_to_ptr.vmem [resolvable:$true] %s287_s18 }
   0xe   : > { %p3098_p1 = scmp.eq.s32.totalorder %s2624_s19, 0  ;;  %p275_p2 = scmp.lt.s32.totalorder %s2528_s16, 3 }
   0xf   : > { %s2531_s21 = smov [#allocation8]   ;;  %s2532_s24 = smov [#allocation7]  }
  0x10   : > { %p2631_p3 = pnand %p1781_p0, %p275_p2  ;;  %s313_s22 = sshll.u32 %s2531_s21, 4  ;;  %s2644_s22 = int_to_ptr.vmem [resolvable:$true] %s313_s22 }
  0x11   : > { %s300_s25 = sshll.u32 %s2532_s24, 4  ;;  %s3106_s1 = sld [smem:[#allocation19_spill]]  ;;  %s2646_s25 = int_to_ptr.vmem [resolvable:$true] %s300_s25 }
  0x12   : > { %s3104_s20 = scalar_select %p2631_p3, 1, 0 }
  0x13   : > { %p2124_p5 = pneg %p2631_p3 }
  0x15   : > { %p2640_p6 = pnand %p2124_p5, %p3098_p1 }
  0x17   : > { %s2280_s28 = scalar_lea.hbm %s3106_s1, 1024  ;;  %p2656_p8 = pneg %p2640_p6 }
  0x18   : > { %p2281_p7 = scmp.ne.s32.totalorder %s3106_s1, %s2280_s28  ;;  %p2287_p11 = scmp.lt.u32.totalorder %s2280_s28, %s3106_s1 }
  0x1a   : > { %p2283_p9 = pnand %p2656_p8, %p2281_p7 }
  0x1c   : > { %p2284_p10 = pneg %p2283_p9 }
  0x1e   : > { %p2289_p12 = pnand %p2287_p11, %p2284_p10 }
  0x20   : > { %2292 = shalt.err (!%p2289_p12)
}
  0x21   : > { %s2293_s21 = scalar_lea.vmem %s2629_s18, 1024  ;;  %p2301_p5 = scmp.lt.s32.totalorder %s2629_s18, %s2629_s18 }
  0x22   : > { %p2294_p13 = scmp.ne.s32.totalorder %s2629_s18, %s2293_s21  ;;  %p2302_p4 = scmp.lt.s32.totalorder %s2293_s21, %s2293_s21 }
  0x24   : > { %p2296_p0 = pnand %p2294_p13, %p2656_p8  ;;  %p2303_p7 = por %p2302_p4, %p2301_p5 }
  0x26   : > { %p2297_p2 = pneg %p2296_p0 }
  0x28   : > { %p2304_p9 = pnand %p2303_p7, %p2297_p2 }
  0x2a   : > { %2307 = shalt.err (!%p2304_p9)
}
  0x2b   : > { %s2533_s24 = smov 64   ;;  %s2534_s26 = smov 4  }
  0x2c   : > { %2127 = dma.hbm_to_vmem [thread:$0]  (!%p2640_p6), %s3106_s1, 1024, %s2629_s18, [#allocation6], %s2533_s24, %s2533_s24, %s2534_s26  }
  0x2d   : > { %s2308_s12 = scalar_lea.hbm %s3089_s3, 1024 }
  0x2e   : > { %p2309_p4 = scmp.ne.s32.totalorder %s3089_s3, %s2308_s12  ;;  %p2315_p12 = scmp.lt.u32.totalorder %s2308_s12, %s3089_s3 }
  0x30   : > { %p2311_p10 = pnand %p2309_p4, %p2656_p8 }
  0x32   : > { %p2312_p11 = pneg %p2311_p10 }
  0x34   : > { %p2317_p13 = pnand %p2315_p12, %p2312_p11 }
  0x36   : > { %2320 = shalt.err (!%p2317_p13)
}
  0x37   : > { %s2321_s18 = scalar_lea.vmem %s2644_s22, 1024  ;;  %p2329_p7 = scmp.lt.s32.totalorder %s2644_s22, %s2644_s22 }
  0x38   : > { %p2322_p0 = scmp.ne.s32.totalorder %s2644_s22, %s2321_s18  ;;  %p2330_p9 = scmp.lt.s32.totalorder %s2321_s18, %s2321_s18 }
  0x3a   : > { %p2324_p2 = pnand %p2322_p0, %p2656_p8  ;;  %p2331_p4 = por %p2330_p9, %p2329_p7 }
  0x3c   : > { %p2325_p5 = pneg %p2324_p2 }
  0x3e   : > { %p2332_p10 = pnand %p2331_p4, %p2325_p5 }
  0x40   : > { %2335 = shalt.err (!%p2332_p10)
}
  0x41   : > { %2133 = dma.hbm_to_vmem [thread:$0]  (!%p2640_p6), %s3089_s3, 1024, %s2644_s22, [#allocation9], %s2533_s24, %s2533_s24, %s2534_s26  }
  0x42   : > { %s2336_s29 = scalar_lea.hbm %s3088_s2, 1024 }
  0x43   : > { %p2337_p11 = scmp.ne.s32.totalorder %s3088_s2, %s2336_s29  ;;  %p2343_p0 = scmp.lt.u32.totalorder %s2336_s29, %s3088_s2 }
  0x45   : > { %p2339_p12 = pnand %p2337_p11, %p2656_p8 }
  0x47   : > { %p2340_p13 = pneg %p2339_p12 }
  0x49   : > { %p2345_p2 = pnand %p2343_p0, %p2340_p13 }
  0x4b   : > { %2348 = shalt.err (!%p2345_p2)
}
  0x4c   : > { %s2349_s22 = scalar_lea.vmem %s2646_s25, 1024  ;;  %p2357_p4 = scmp.lt.s32.totalorder %s2646_s25, %s2646_s25 }
  0x4d   : > { %p2350_p5 = scmp.ne.s32.totalorder %s2646_s25, %s2349_s22  ;;  %p2358_p10 = scmp.lt.s32.totalorder %s2349_s22, %s2349_s22 }
  0x4f   : > { %p2352_p7 = pnand %p2350_p5, %p2656_p8  ;;  %p2359_p11 = por %p2358_p10, %p2357_p4 }
  0x51   : > { %p2353_p9 = pneg %p2352_p7 }
  0x53   : > { %p2360_p12 = pnand %p2359_p11, %p2353_p9 }
  0x55   : > { %2363 = shalt.err (!%p2360_p12)
}
  0x56   : > { %2130 = dma.hbm_to_vmem [thread:$0]  (!%p2640_p6), %s3088_s2, 1024, %s2646_s25, [#allocation6], %s2533_s24, %s2533_s24, %s2534_s26  }
  0x57   : > { %s2535_s10 = smov [#allocation10]   ;;  %s2536_s28 = smov [#allocation11]  }
  0x58   : > { %s326_s27 = sshll.u32 %s2535_s10, 4  ;;  %s339_s29 = sshll.u32 %s2536_s28, 4  ;;  %s327_s27 = int_to_ptr.vmem [resolvable:$true] %s326_s27  ;;  %s340_s29 = int_to_ptr.vmem [resolvable:$true] %s339_s29 }
  0x59   : > { %s2364_s17 = scalar_lea.hbm %s3090_s4, 1024 }
  0x5a   : > { %p2365_p13 = scmp.ne.s32.totalorder %s3090_s4, %s2364_s17  ;;  %p2371_p5 = scmp.lt.u32.totalorder %s2364_s17, %s3090_s4 }
  0x5c   : > { %p2367_p0 = pnand %p2365_p13, %p2656_p8 }
  0x5e   : > { %p2368_p2 = pneg %p2367_p0 }
  0x60   : > { %p2373_p7 = pnand %p2371_p5, %p2368_p2 }
  0x62   : > { %2376 = shalt.err (!%p2373_p7)
}
  0x63   : > { %s2377_s25 = scalar_lea.vmem %s327_s27, 1024  ;;  %p2385_p11 = scmp.lt.s32.totalorder %s327_s27, %s327_s27 }
  0x64   : > { %p2378_p9 = scmp.ne.s32.totalorder %s327_s27, %s2377_s25  ;;  %p2386_p12 = scmp.lt.s32.totalorder %s2377_s25, %s2377_s25 }
  0x66   : > { %p2380_p4 = pnand %p2378_p9, %p2656_p8  ;;  %p2387_p1 = por %p2386_p12, %p2385_p11 }
  0x68   : > { %p2381_p10 = pneg %p2380_p4 }
  0x6a   : > { %p2388_p3 = pnand %p2387_p1, %p2381_p10 }
  0x6c   : > { %2391 = shalt.err (!%p2388_p3)
}
  0x6d   : > { %2136 = dma.hbm_to_vmem [thread:$0]  (!%p2640_p6), %s3090_s4, 1024, %s327_s27, [#allocation9], %s2533_s24, %s2533_s24, %s2534_s26  }
  0x6e   : > { %s2392_s30 = scalar_lea.hbm %s3091_s5, 1024 }
  0x6f   : > { %p2393_p1 = scmp.ne.s32.totalorder %s3091_s5, %s2392_s30  ;;  %p2399_p0 = scmp.lt.u32.totalorder %s2392_s30, %s3091_s5 }
  0x71   : > { %p2395_p3 = pnand %p2393_p1, %p2656_p8 }
  0x73   : > { %p2396_p13 = pneg %p2395_p3 }
  0x75   : > { %p2401_p2 = pnand %p2399_p0, %p2396_p13 }
  0x77   : > { %2404 = shalt.err (!%p2401_p2)
}
  0x78   : > { %s2405_s18 = scalar_lea.vmem %s340_s29, 1024  ;;  %p2413_p4 = scmp.lt.s32.totalorder %s340_s29, %s340_s29 }
  0x79   : > { %p2406_p5 = scmp.ne.s32.totalorder %s340_s29, %s2405_s18  ;;  %p2414_p10 = scmp.lt.s32.totalorder %s2405_s18, %s2405_s18 }
  0x7b   : > { %p2408_p7 = pnand %p2406_p5, %p2656_p8  ;;  %p2415_p11 = por %p2414_p10, %p2413_p4 }
  0x7d   : > { %p2409_p9 = pneg %p2408_p7 }
  0x7f   : > { %p2416_p12 = pnand %p2415_p11, %p2409_p9 }
  0x81   : > { %2419 = shalt.err (!%p2416_p12)
}
  0x82   : > { %2139 = dma.hbm_to_vmem [thread:$0]  (!%p2640_p6), %s3091_s5, 1024, %s340_s29, [#allocation12], %s2533_s24, %s2533_s24, %s2534_s26  }
  0x83   : > { %s1780_s23 = sadd.s32 4294967294, %s2528_s16   ;;  %s2776_s11 = sadd.s32 1, %s2528_s16  }
  0x84   : > { %s36_s1 = sadd.s32 1, %s2524_s15  ;;  %s33_s9 = ssub.s32 %s2528_s16, %s2776_s11 }
  0x85   : > { %p43_p8 = scmp.ne.s32.totalorder %s2524_s15, %s2520_s14  ;;  %p34_p1 = scmp.eq.s32.totalorder %s33_s9, 0 }
  0x86   : > { %p44_p3 = scmp.eq.s32.totalorder %s2528_s16, 0  ;;  %p49_p13 = scmp.ne.s32.totalorder %s2520_s14, %s2516_s13 }
  0x87   : > { %p262_p0 = scmp.eq.s32.totalorder %s2624_s19, 1  ;;  %p3108_p5 = scmp.eq.s32.totalorder %s2624_s19, 0 }
  0x88   : > { %s2788_s10 = scalar_select %p34_p1, %s2524_s15, %s36_s1  }
  0x89   : > { %p45_p2 = por %p44_p3, %p43_p8  ;;  %p2792_p7 = por %p3108_p5, %p49_p13 }
  0x8a   : > { %p2796_p6 = por %p262_p0, %p43_p8  ;;  %p268_p9 = scmp.eq.s32.totalorder %s1780_s23, 1 }
  0x8b   : > { %p2153_p4 = scmp.lt.s32.totalorder %s2528_s16, 2  ;;  %s365_s26 = sand.u32 1, %s2524_s15  }
  0x8c   : > { %s3110_s24 = scalar_select %p2796_p6, 1, 0 }
  0x8d   : > { %p2802_p10 = por %p268_p9, %p49_p13  ;;  %s1788_s30 = sshll.u32 %s365_s26, 4 }
  0x8e   : > { %s1860_s12 = sshll.u32 %s2528_s16, 8  ;;  %s369_s18 = scalar_lea.vmem [#allocation2], %s1788_s30 }
  0x8f   : > { %s3111_s29 = scalar_select %p2802_p10, 1, 0 }
  0x90   : > { %s2810_s22 = scalar_lea.hbm %s3086_s0, %s1860_s12  ;;  %s376_s27 = sshll.u32 %s369_s18, 4  ;;  %s2816_s27 = int_to_ptr.vmem [resolvable:$true] %s376_s27 }
  0x91   : > { %p2812_p11 = pnand %p2153_p4, %p45_p2  ;;  %s2818_s23 = scalar_lea.sflag [#allocation3], %s365_s26 }
  0x92   : > { %s2420_s1 = scalar_lea.hbm %s2810_s22, 256  ;;  %s2425_s12 = scalar_lea.hbm %s3086_s0, 512 }
  0x93   : > { %p2421_p12 = scmp.ne.s32.totalorder %s2810_s22, %s2420_s1  ;;  %p2422_p8 = pneg %p2812_p11 }
  0x94   : > { %p2426_p13 = scmp.lt.u32.totalorder %s2810_s22, %s3086_s0  ;;  %p2427_p0 = scmp.lt.u32.totalorder %s2425_s12, %s2420_s1 }
  0x95   : > { %p2423_p1 = pnand %p2422_p8, %p2421_p12  ;;  %p2429_p5 = scmp.lt.u32.totalorder %s2420_s1, %s2810_s22 }
  0x96   : > { %p2428_p2 = por %p2427_p0, %p2426_p13 }
  0x97   : > { %p2424_p3 = pneg %p2423_p1 }
  0x98   : > { %p2430_p9 = por %p2429_p5, %p2428_p2 }
  0x9a   : > { %p2431_p4 = pnand %p2430_p9, %p2424_p3 }
  0x9c   : > { %2434 = shalt.err (!%p2431_p4)
}
  0x9d   : > { %s2435_s26 = scalar_lea.vmem %s2816_s27, 256  ;;  %s2537_s18 = smov [#allocation2]  }
  0x9e   : > { %p2436_p12 = scmp.ne.s32.totalorder %s2816_s27, %s2435_s26  ;;  %s2440_s9 = sshll.u32 %s2537_s18, 4  ;;  %s2441_s9 = int_to_ptr.vmem [resolvable:$false] %s2440_s9 }
  0x9f   : > { %s2442_s30 = scalar_lea.vmem %s2441_s9, 512  ;;  %p2443_p6 = scmp.lt.s32.totalorder %s2816_s27, %s2441_s9 }
  0xa0   : > { %p2438_p1 = pnand %p2436_p12, %p2422_p8  ;;  %p2444_p13 = scmp.lt.s32.totalorder %s2442_s30, %s2435_s26 }
  0xa2   : > { %p2439_p10 = pneg %p2438_p1  ;;  %p2445_p0 = por %p2444_p13, %p2443_p6 }
  0xa4   : > { %p2446_p2 = pnand %p2445_p0, %p2439_p10 }
  0xa6   : > { %2449 = shalt.err (!%p2446_p2)
}
  0xa7   : > { %s2538_s1 = smov 128   ;;  %s2539_s12 = smov 8  }
  0xa8   : > { %2143 = dma.hbm_to_vmem [thread:$0]  (!%p2812_p11), %s2810_s22, 256, %s2816_s27, %s2818_s23, %s2538_s1, %s2538_s1, %s2539_s12  }
  0xa9   : > { %p3113_p8 = scmp.ne.s32.totalorder %s3104_s20, 0 }
  0xaa   : > { %s2849_s17 = sand.u32 (!%p3113_p8), 1, %s2520_s14  }
  0xab   : > { %388 = sbr.rel (%p3113_p8) target bundleno = 3166 (0xc5e), region = 60  ;;  %s1792_s21 = sshll.u32 (!%p3113_p8), %s2849_s17, 4 }
  0xac   : > { %s391_s26 = scalar_lea.sflag (!%p3113_p8), [#allocation3], %s2849_s17  ;;  %s2855_s18 = scalar_lea.vmem (!%p3113_p8), [#allocation2], %s1792_s21 }
  0xb2   : > { %2495 = dma.done.wait (%p2792_p7), %s391_s26, 256  }
  0xb3   : > { %2497 = vsyncadd (%p2792_p7), %s391_s26, 4294967040  ;;  %p3114_p6 = scmp.eq.s32.totalorder %s2624_s19, 0 }
  0xb5   : > { %2499 = dma.done.wait (%p3114_p6), [#allocation6], 2048   ;;  %p3115_p10 = pmov %p3114_p6 }
  0xb6   : > { %p3116_p11 = pmov %p3114_p6 }
  0xb7   : > { %2501 = vsyncadd (%p3115_p10), [#allocation6], 4294965248 }
  0xb8   : > { %2503 = dma.done.wait (%p3116_p11), [#allocation9], 2048   ;;  %p3117_p3 = pmov %p3114_p6 }
  0xba   : > { %2505 = vsyncadd (%p3117_p3), [#allocation9], 4294965248  ;;  %p3118_p5 = pmov %p3117_p3 }
  0xbb   : > { %p3119_p9 = pmov %p3117_p3 }
  0xbc   : > { %2507 = dma.done.wait (%p3118_p5), [#allocation12], 1024  }
  0xbd   : > { %2509 = vsyncadd (%p3119_p9), [#allocation12], 4294966272  ;;  %v2540_v0 = vmov 0.0   ;;  %vm2541_vm0 = vmmov 0   ;;  %v2208_v1 = vld [vmem:[#allocation7] sm:$0xff]   ;;  %v2209_v2 = vld [vmem:[#allocation7 + $0x8] sm:$0xff]  }
  0xbe   : > { %1946 = vmatprep.subr.bf16.mxu1 %v2540_v0  ;;  %1926 = vmatprep.subr.bf16.mxu0 %v2540_v0  ;;  %v2210_v3 = vld [vmem:[#allocation5] sm:$0xff]   ;;  %v2212_v4 = vld [vmem:[#allocation5 + $0x8] sm:$0xff]   ;;  %v2211_v5 = vld [vmem:[#allocation7 + $0x10] sm:$0xff]   ;;  %vm803_vm1 = vcmask 261120   ;;  %vm851_vm2 = vcmask 130048   ;;  %s2542_s25 = smov 96  }
  0xbf   : > { %1962 = vmatprep.mubr.msk.bf16.mxu1 %vm2541_vm0, %v2540_v0  ;;  %1942 = vmatprep.mubr.msk.bf16.mxu0 %vm2541_vm0, %v2540_v0  ;;  %v2214_v6 = vld [vmem:[#allocation5 + $0x10] sm:$0xff]   ;;  %v2213_v7 = vld [vmem:[#allocation7 + $0x18] sm:$0xff]   ;;  %v2215_v9 = vld [vmem:[#allocation7 + $0x20] sm:$0xff]   ;;  %s2543_s30 = smov 64   ;;  %s2544_s1 = smov 32  }
  0xc0   : > { %1947 = vmatpush3.bf16.msra.mxu1 %v2208_v1  ;;  %1927 = vmatpush3.bf16.msra.mxu0 %v2210_v3  ;;  %v2216_v8 = vld [vmem:[#allocation5 + $0x18] sm:$0xff]   ;;  %v2217_v10 = vld [vmem:[#allocation7 + $0x28] sm:$0xff]   ;;  %v2218_v11 = vld [vmem:[#allocation5 + $0x20] sm:$0xff]   ;;  %s450_s20 = scalar_lea.vmem [#allocation13], %s1792_s21  ;;  %s1861_s22 = sshll.u32 %s2624_s19, 8 }
  0xc1   : > { %1948 = vmatprep.subr.bf16.mxu1 %v2540_v0  ;;  %1928 = vmatprep.subr.bf16.mxu0 %v2540_v0  ;;  %v2220_v12 = vld [vmem:[#allocation5 + $0x28] sm:$0xff]   ;;  %v2219_v13 = vld [vmem:[#allocation7 + $0x30] sm:$0xff]   ;;  %v2221_v15 = vld [vmem:[#allocation7 + $0x38] sm:$0xff]   ;;  %s1659_s28 = sshll.u32 %s450_s20, 4  ;;  %s3121_s23 = sld [smem:[#allocation21_spill]]  ;;  %s3037_s28 = int_to_ptr.vmem [resolvable:$true] %s1659_s28 }
  0xc2   : > { %v2222_v14 = vld [vmem:[#allocation5 + $0x30] sm:$0xff]   ;;  %v2894_v17 = vld [vmem:[%s2855_s18 + $0x8] sm:$0xff]  ;;  %v1808_v20 = vld [vmem:[%s3093_s7] ss:$0 sm:$0xff]  ;;  %s1646_s21 = scalar_lea.sflag [#allocation4], %s2849_s17  ;;  %s2450_s19 = scalar_lea.vmem %s3037_s28, 256 }
  0xc3   : > { %v2891_v16 = vld [vmem:[%s2855_s18] sm:$0xff]  ;;  %v2223_v18 = vld [vmem:[#allocation5 + $0x38] sm:$0xff]   ;;  %v2225_v38 = vld [vmem:[#allocation8 + $0x8] sm:$0xff]   ;;  %s3120_s18 = sld [smem:[#allocation20_spill]]  ;;  %p2451_p7 = scmp.ne.s32.totalorder %s3037_s28, %s2450_s19 }
  0xc4   : > { %1949 = vmatpush3.bf16.msra.mxu1 %v2209_v2  ;;  %1929 = vmatpush3.bf16.msra.mxu0 %v2212_v4  ;;  %v454_v19 = vpack.c.bf16 %v2894_v17, %v2891_v16  ;;  %v1799_v22 = vld [vmem:[%s3092_s6] ss:$0 sm:$0xff]  ;;  %v2226_v39 = vld [vmem:[#allocation8 + $0x10] sm:$0xff]   ;;  %v2227_v40 = vld [vmem:[#allocation8 + $0x18] sm:$0xff]   ;;  %p3122_p4 = scmp.ne.s32.totalorder %s3110_s24, 0 }
  0xc5   : > { %1950 = vmatprep.subr.bf16.mxu1 %v2540_v0  ;;  %1930 = vmatprep.subr.bf16.mxu0 %v2540_v0  ;;  %v2224_v37 = vld [vmem:[#allocation8] sm:$0xff]   ;;  %v2229_v42 = vld [vmem:[#allocation8 + $0x28] sm:$0xff]   ;;  %v2230_v43 = vld [vmem:[#allocation8 + $0x30] sm:$0xff]  }
  0xc6   : > { %v2228_v41 = vld [vmem:[#allocation8 + $0x20] sm:$0xff]   ;;  %v2231_v44 = vld [vmem:[#allocation8 + $0x38] sm:$0xff]   ;;  %p2452_p12 = pnand %p2451_p7, %p3122_p4 }
  0xc7   : > { %v1817_v1 = vld [vmem:[%s3094_s8] ss:$0 sm:$0xff]  ;;  %s3042_s9 = scalar_lea.hbm %s3121_s23, %s1861_s22 }
  0xc8   : > { %1951 = vmatpush3.bf16.msra.mxu1 %v2211_v5  ;;  %1931 = vmatpush3.bf16.msra.mxu0 %v2214_v6  ;;  %p2453_p1 = pneg %p2452_p12 }
  0xc9   : > { %1952 = vmatprep.subr.bf16.mxu1 %v2540_v0  ;;  %1932 = vmatprep.subr.bf16.mxu0 %v2540_v0 }
  0xcc   : > { %1953 = vmatpush3.bf16.msra.mxu1 %v2213_v7  ;;  %1933 = vmatpush3.bf16.msra.mxu0 %v2216_v8 }
  0xcd   : > { %1954 = vmatprep.subr.bf16.mxu1 %v2540_v0  ;;  %1934 = vmatprep.subr.bf16.mxu0 %v2540_v0 }
  0xd0   : > { %1955 = vmatpush3.bf16.msra.mxu1 %v2215_v9  ;;  %1935 = vmatpush3.bf16.msra.mxu0 %v2218_v11 }
  0xd1   : > { %1956 = vmatprep.subr.bf16.mxu1 %v2540_v0  ;;  %1936 = vmatprep.subr.bf16.mxu0 %v2540_v0 }
  0xd4   : > { %1957 = vmatpush3.bf16.msra.mxu1 %v2217_v10  ;;  %1937 = vmatpush3.bf16.msra.mxu0 %v2220_v12  ;;  %v2232_v12 = vld [vmem:[#allocation10] sm:$0xff]  }
  0xd5   : > { %1958 = vmatprep.subr.bf16.mxu1 %v2540_v0  ;;  %1938 = vmatprep.subr.bf16.mxu0 %v2540_v0 }
  0xd8   : > { %1959 = vmatpush3.bf16.msra.mxu1 %v2219_v13  ;;  %1939 = vmatpush3.bf16.msra.mxu0 %v2222_v14  ;;  %v2233_v14 = vld [vmem:[#allocation10 + $0x8] sm:$0xff]  }
  0xd9   : > { %1960 = vmatprep.subr.bf16.mxu1 %v2540_v0  ;;  %1940 = vmatprep.subr.bf16.mxu0 %v2540_v0 }
  0xdc   : > { %1961 = vmatpush3.bf16.msra.mxu1 %v2221_v15  ;;  %1941 = vmatpush3.bf16.msra.mxu0 %v2223_v18 }
  0xdd   : > { %1986 = vmatprep.subr.bf16.mxu1 %v2540_v0  ;;  %1966 = vmatprep.subr.bf16.mxu0 %v2540_v0 }
  0xdf   : > { %1963 = vmatmul.mubr.bf16.vlgmr.msra.gmra.mrb[0].mxu1 %v454_v19  ;;  %1943 = vmatmul.mubr.bf16.vlgmr.msra.gmra.mrb[0].mxu0 %v454_v19 }
  0xe0   : > { %1988 = vmatprep.mubr.msk.bf16.mxu1 %vm2541_vm0, %v2540_v0  ;;  %1982 = vmatprep.mubr.msk.bf16.mxu0 %vm2541_vm0, %v2540_v0 }
  0xe1   : > { %1967 = vmatpush3.bf16.msra.mxu0 %v2224_v37 }
  0xe2   : > { %1968 = vmatprep.subr.bf16.mxu0 %v2540_v0 }
  0xe5   : > { %1969 = vmatpush3.bf16.msra.mxu0 %v2225_v38 }
  0xe6   : > { %1970 = vmatprep.subr.bf16.mxu0 %v2540_v0 }
  0xe9   : > { %1971 = vmatpush3.bf16.msra.mxu0 %v2226_v39 }
  0xea   : > { %1972 = vmatprep.subr.bf16.mxu0 %v2540_v0 }
  0xed   : > { %1973 = vmatpush3.bf16.msra.mxu0 %v2227_v40 }
  0xee   : > { %1974 = vmatprep.subr.bf16.mxu0 %v2540_v0 }
  0xf1   : > { %1975 = vmatpush3.bf16.msra.mxu0 %v2228_v41 }
  0xf2   : > { %1976 = vmatprep.subr.bf16.mxu0 %v2540_v0 }
  0xf5   : > { %1977 = vmatpush3.bf16.msra.mxu0 %v2229_v42 }
  0xf6   : > { %1978 = vmatprep.subr.bf16.mxu0 %v2540_v0 }
  0xf9   : > { %1979 = vmatpush3.bf16.msra.mxu0 %v2230_v43 }
  0xfa   : > { %1980 = vmatprep.subr.bf16.mxu0 %v2540_v0 }
  0xfd   : > { %1981 = vmatpush3.bf16.msra.mxu0 %v2231_v44 }
  0xfe   : > { %2046 = vmatprep.subr.bf16.mxu0 %v2540_v0 }
 0x100   : > { %1983 = vmatmul.mubr.bf16.vlgmr.msra.gmra.mrb[4].mxu0 %v454_v19 }
 0x101   : > { %2048 = vmatprep.mubr.msk.bf16.mxu0 %vm2541_vm0, %v2540_v0 }
 0x1b2   : > { %v672_v21 = vpop.f32.mrb[0].mxu1  ;;  %v560_v25 = vpop.f32.mrb[0].mxu0 }
 0x1b3   : > { %v1964_v23 = vpop.f32.mrb[1].mxu1  ;;  %v673_v26 = vadd.f32 %v1808_v20, %v672_v21  ;;  %v561_v29 = vadd.f32 %v1799_v22, %v560_v25  ;;  %v1944_v30 = vpop.f32.mrb[1].mxu0 }
 0x1b4   : > { %v675_v24 = vpop.f32.mrb[2].mxu1  ;;  %v563_v31 = vpop.f32.mrb[2].mxu0 }
 0x1b5   : > { %v676_v27 = vadd.f32 %v1808_v20, %v675_v24  ;;  %v1965_v28 = vpop.f32.mrb[3].mxu1  ;;  %v564_v33 = vadd.f32 %v1799_v22, %v563_v31  ;;  %v1945_v34 = vpop.f32.mrb[3].mxu0 }
 0x1b7   : > { %v2913_v32 = vpack.c.bf16 %v676_v27, %v673_v26  ;;  %v2915_v35 = vpack.c.bf16 %v564_v33, %v561_v29 }
 0x1b9   : > { %v808_v36 = vsel %vm803_vm1, %v2913_v32, 0 }
 0x1ba   : > { %1987 = vmatpush3.bf16.xpose.msra.mxu1 %v808_v36 }
 0x1bb   : > { %1992 = vmatprep.subr.bf16.mxu1 %v2540_v0 }
 0x1c1   : > { %1989 = vmatmul.mubr.msk.bf16.vlgmr.msra.gmra.mrb[4].mxu1 %vm803_vm1, %v2915_v35 }
 0x1c2   : > { %1994 = vmatprep.mubr.msk.bf16.mxu1 %vm2541_vm0, %v2540_v0 }
 0x1d3   : > { %v784_v61 = vpop.f32.mrb[4].mxu0 }
 0x1d4   : > { %v1984_v62 = vpop.f32.mrb[5].mxu0  ;;  %v785_v3 = vadd.f32 %v1817_v1, %v784_v61 }
 0x1d5   : > { %v787_v63 = vpop.f32.mrb[6].mxu0 }
 0x1d6   : > { %v1985_v2 = vpop.f32.mrb[7].mxu0  ;;  %v788_v4 = vadd.f32 %v1817_v1, %v787_v63 }
 0x1d8   : > { %v2945_v5 = vpack.c.bf16 %v788_v4, %v785_v3 }
 0x1da   : > { %1993 = vmatpush3.bf16.msra.mxu1 %v2945_v5 }
 0x1db   : > { %1998 = vmatprep.subr.bf16.mxu1 %v2540_v0 }
 0x294   : > { %v844_v45 = vpop.f32.mrb[4].mxu1 }
 0x295   : > { %v1990_v46 = vpop.f32.mrb[5].mxu1  ;;  %v852_v47 = vsel %vm851_vm2, %v844_v45, -inf }
 0x296   : > { %853 = vmax.xlane.f32.xlu0 %v852_v47  ;;  %v847_v48 = vpop.f32.mrb[6].mxu1 }
 0x297   : > { %v1991_v49 = vpop.f32.mrb[7].mxu1  ;;  %v855_v50 = vsel %vm851_vm2, %v847_v48, -inf }
 0x29a   : > { %856 = vmax.xlane.f32.xlu0 %v855_v50 }
 0x2b0   : > { %986 = vrot.lane.b32.xlu0 %v2913_v32, %s2542_s25 }
 0x323   : > { %v854_v51 = vpop.xlane.xlu0 %853 }
 0x324   : > { %v858_v52 = vsub.f32 %v844_v45, %v854_v51 }
 0x326   : > { %v860_v53 = vmul.f32 1.442695, %v858_v52 }
 0x327   : > { %v857_v54 = vpop.xlane.xlu0 %856 }
 0x328   : > { %2248 = vpow2.f32 %v860_v53  ;;  %v859_v55 = vsub.f32 %v847_v48, %v857_v54  ;;  %v2234_v53 = vld [vmem:[#allocation10 + $0x10] sm:$0xff]   ;;  %v2235_v54 = vld [vmem:[#allocation10 + $0x18] sm:$0xff]  }
 0x32a   : > { %v862_v56 = vmul.f32 1.442695, %v859_v55 }
 0x32b   : > { %v987_v19 = vpop.permute.xlu0 %986 }
 0x32c   : > { %2250 = vpow2.f32 %v862_v56  ;;  %v992_v23 = vsel %vm803_vm1, %v987_v19, 0 }
 0x332   : > { %v2249_v57 = vpop.eup %2248 }
 0x333   : > { %v864_v58 = vsel %vm851_vm2, %v2249_v57, 0.0 }
 0x334   : > { %865 = vadd.xlane.f32.xlu1 %v864_v58 }
 0x336   : > { %v2251_v59 = vpop.eup %2250 }
 0x337   : > { %v867_v60 = vsel %vm851_vm2, %v2251_v59, 0.0 }
 0x338   : > { %868 = vadd.xlane.f32.xlu1 %v867_v60 }
 0x349   : > { %983 = vrot.lane.b32.xlu1 %v2915_v35, %s2542_s25 }
 0x3c1   : > { %v866_v6 = vpop.xlane.xlu1 %865 }
 0x3c2   : > { %2252 = vrcp.f32 %v866_v6 }
 0x3c5   : > { %v869_v7 = vpop.xlane.xlu1 %868 }
 0x3c6   : > { %2254 = vrcp.f32 %v869_v7 }
 0x3c9   : > { %v984_v24 = vpop.permute.xlu1 %983 }
 0x3cc   : > { %v2253_v8 = vpop.eup %2252 }
 0x3cd   : > { %v872_v10 = vmul.f32 %v2253_v8, %v2249_v57 }
 0x3d0   : > { %v2255_v9 = vpop.eup %2254 }
 0x3d1   : > { %v873_v11 = vmul.f32 %v2255_v9, %v2251_v59 }
 0x3d3   : > { %v874_v13 = vpack.c.bf16 %v873_v11, %v872_v10 }
 0x3d5   : > { %1995 = vmatmul.mubr.msk.bf16.vlgmr.msra.gmra.mrb[8].mxu1 %vm851_vm2, %v874_v13 }
 0x3d6   : > { %1999 = vmatpush3.bf16.msra.mxu1 %v2232_v12  ;;  %2002 = vmatprep.mubr.msk.bf16.mxu1 %vm2541_vm0, %v2540_v0 }
 0x3d7   : > { %2000 = vmatprep.subr.bf16.mxu1 %v2540_v0 }
 0x3da   : > { %2001 = vmatpush3.bf16.msra.mxu1 %v2233_v14 }
 0x3db   : > { %2006 = vmatprep.subr.bf16.mxu1 %v2540_v0 }
 0x4a8   : > { %v912_v15 = vpop.f32.mrb[8].mxu1 }
 0x4a9   : > { %v1996_v18 = vpop.f32.mrb[9].mxu1 }
 0x4aa   : > { %v915_v20 = vpop.f32.mrb[10].mxu1 }
 0x4ab   : > { %v919_v21 = vpack.c.bf16 %v915_v20, %v912_v15  ;;  %v1997_v22 = vpop.f32.mrb[11].mxu1 }
 0x4ad   : > { %2003 = vmatmul.mubr.msk.bf16.vlgmr.msra.gmra.mrb[12].mxu1 %vm803_vm1, %v919_v21 }
 0x4ae   : > { %2007 = vmatpush3.bf16.xpose.msra.mxu1 %v992_v23  ;;  %2008 = vmatprep.mubr.msk.bf16.mxu1 %vm2541_vm0, %v2540_v0 }
 0x4af   : > { %2012 = vmatprep.subr.bf16.mxu1 %v2540_v0 }
 0x4b5   : > { %2009 = vmatmul.mubr.msk.bf16.vlgmr.msra.gmra.mrb[16].mxu1 %vm803_vm1, %v984_v24 }
 0x4b6   : > { %2014 = vmatprep.mubr.msk.bf16.mxu1 %vm2541_vm0, %v2540_v0 }
 0x588   : > { %v1028_v25 = vpop.f32.mrb[16].mxu1 }
 0x589   : > { %v2010_v26 = vpop.f32.mrb[17].mxu1  ;;  %v1035_v27 = vsel %vm851_vm2, %v1028_v25, -inf }
 0x58a   : > { %1036 = vmax.xlane.f32.xlu1 %v1035_v27  ;;  %v1031_v28 = vpop.f32.mrb[18].mxu1 }
 0x58b   : > { %v2011_v29 = vpop.f32.mrb[19].mxu1  ;;  %v1038_v30 = vsel %vm851_vm2, %v1031_v28, -inf }
 0x58c   : > { %1039 = vmax.xlane.f32.xlu0 %v1038_v30 }
 0x617   : > { %v1037_v31 = vpop.xlane.xlu1 %1036 }
 0x618   : > { %v1041_v33 = vsub.f32 %v1028_v25, %v1037_v31 }
 0x619   : > { %v1040_v34 = vpop.xlane.xlu0 %1039 }
 0x61a   : > { %v1043_v36 = vmul.f32 1.442695, %v1041_v33  ;;  %v1042_v37 = vsub.f32 %v1031_v28, %v1040_v34 }
 0x61c   : > { %2256 = vpow2.f32 %v1043_v36  ;;  %v1045_v38 = vmul.f32 1.442695, %v1042_v37 }
 0x61e   : > { %2258 = vpow2.f32 %v1045_v38 }
 0x626   : > { %v2257_v39 = vpop.eup %2256 }
 0x627   : > { %v1047_v40 = vsel %vm851_vm2, %v2257_v39, 0.0 }
 0x628   : > { %v2259_v41 = vpop.eup %2258  ;;  %1048 = vadd.xlane.f32.xlu0 %v1047_v40 }
 0x629   : > { %v1050_v42 = vsel %vm851_vm2, %v2259_v41, 0.0 }
 0x62a   : > { %1051 = vadd.xlane.f32.xlu1 %v1050_v42 }
 0x63b   : > { %1171 = vrot.lane.b32.xlu1 %v2913_v32, %s2543_s30 }
 0x63e   : > { %1059 = vrot.lane.b32.xlu0 %v2945_v5, %s2542_s25 }
 0x63f   : > { %1169 = vrot.lane.b32.xlu1 %v2915_v35, %s2543_s30 }
 0x642   : > { %1353 = vrot.lane.b32.xlu0 %v2915_v35, %s2544_s1 }
 0x643   : > { %1355 = vrot.lane.b32.xlu1 %v2913_v32, %s2544_s1 }
 0x6b5   : > { %v1049_v43 = vpop.xlane.xlu0 %1048 }
 0x6b6   : > { %2260 = vrcp.f32 %v1049_v43 }
 0x6b7   : > { %v1052_v44 = vpop.xlane.xlu1 %1051 }
 0x6b8   : > { %2262 = vrcp.f32 %v1052_v44 }
 0x6b9   : > { %v1060_v45 = vpop.permute.xlu0 %1059 }
 0x6ba   : > { %2013 = vmatpush3.bf16.msra.mxu1 %v1060_v45 }
 0x6bb   : > { %v1172_v46 = vpop.permute.xlu1 %1171  ;;  %2018 = vmatprep.subr.bf16.mxu1 %v2540_v0 }
 0x6bc   : > { %v1177_v61 = vsel %vm803_vm1, %v1172_v46, 0  ;;  %v2236_v46 = vld [vmem:[#allocation10 + $0x20] sm:$0xff]  }
 0x6bd   : > { %v1354_v55 = vpop.permute.xlu0 %1353 }
 0x6bf   : > { %v1170_v47 = vpop.permute.xlu1 %1169 }
 0x6c0   : > { %v2261_v48 = vpop.eup %2260 }
 0x6c1   : > { %v1055_v50 = vmul.f32 %v2261_v48, %v2257_v39 }
 0x6c2   : > { %v2263_v49 = vpop.eup %2262 }
 0x6c3   : > { %v1056_v51 = vmul.f32 %v2263_v49, %v2259_v41  ;;  %v1356_v52 = vpop.permute.xlu1 %1355 }
 0x6c4   : > { %v1361_v35 = vsel %vm803_vm1, %v1356_v52, 0  ;;  %v2237_v52 = vld [vmem:[#allocation10 + $0x28] sm:$0xff]  }
 0x6c5   : > { %2047 = vmatpush3.bf16.xpose.msra.mxu0 %v1361_v35  ;;  %v1057_v32 = vpack.c.bf16 %v1056_v51, %v1055_v50  ;;  %v2240_v35 = vld [vmem:[#allocation11] sm:$0xff]  }
 0x6c6   : > { %2052 = vmatprep.subr.bf16.mxu0 %v2540_v0 }
 0x6c7   : > { %2015 = vmatmul.mubr.msk.bf16.vlgmr.msra.gmra.mrb[20].mxu1 %vm851_vm2, %v1057_v32  ;;  %v2242_v32 = vld [vmem:[#allocation11 + $0x10] sm:$0xff]  }
 0x6c8   : > { %2019 = vmatpush3.bf16.msra.mxu1 %v2234_v53  ;;  %2022 = vmatprep.mubr.msk.bf16.mxu1 %vm2541_vm0, %v2540_v0  ;;  %v2241_v53 = vld [vmem:[#allocation11 + $0x8] sm:$0xff]  }
 0x6c9   : > { %2020 = vmatprep.subr.bf16.mxu1 %v2540_v0 }
 0x6cc   : > { %2049 = vmatmul.mubr.msk.bf16.vlgmr.msra.gmra.mrb[8].mxu0 %vm803_vm1, %v1354_v55  ;;  %2021 = vmatpush3.bf16.msra.mxu1 %v2235_v54  ;;  %v2243_v54 = vld [vmem:[#allocation11 + $0x18] sm:$0xff]   ;;  %v2244_v55 = vld [vmem:[#allocation11 + $0x20] sm:$0xff]  }
 0x6cd   : > { %2026 = vmatprep.subr.bf16.mxu1 %v2540_v0  ;;  %2054 = vmatprep.mubr.msk.bf16.mxu0 %vm2541_vm0, %v2540_v0 }
 0x79a   : > { %v1099_v56 = vpop.f32.mrb[20].mxu1 }
 0x79b   : > { %v2016_v57 = vpop.f32.mrb[21].mxu1 }
 0x79c   : > { %v1102_v58 = vpop.f32.mrb[22].mxu1 }
 0x79d   : > { %v1106_v59 = vpack.c.bf16 %v1102_v58, %v1099_v56  ;;  %v2017_v60 = vpop.f32.mrb[23].mxu1  ;;  %v2245_v56 = vld [vmem:[#allocation11 + $0x28] sm:$0xff]  }
 0x79e   : > { %v2238_v60 = vld [vmem:[#allocation10 + $0x30] sm:$0xff]  }
 0x79f   : > { %2023 = vmatmul.mubr.msk.bf16.vlgmr.msra.gmra.mrb[12].mxu1 %vm803_vm1, %v1106_v59  ;;  %v1397_v62 = vpop.f32.mrb[8].mxu0 }
 0x7a0   : > { %2027 = vmatpush3.bf16.xpose.msra.mxu1 %v1177_v61  ;;  %v2050_v63 = vpop.f32.mrb[9].mxu0  ;;  %2028 = vmatprep.mubr.msk.bf16.mxu1 %vm2541_vm0, %v2540_v0  ;;  %v1404_v10 = vsel %vm851_vm2, %v1397_v62, -inf }
 0x7a1   : > { %v1400_v1 = vpop.f32.mrb[10].mxu0  ;;  %2032 = vmatprep.subr.bf16.mxu1 %v2540_v0  ;;  %v2239_v63 = vld [vmem:[#allocation10 + $0x38] sm:$0xff]  }
 0x7a2   : > { %v2051_v2 = vpop.f32.mrb[11].mxu0  ;;  %v1407_v11 = vsel %vm851_vm2, %v1400_v1, -inf }
 0x7a7   : > { %2029 = vmatmul.mubr.msk.bf16.vlgmr.msra.gmra.mrb[24].mxu1 %vm803_vm1, %v1170_v47 }
 0x7a8   : > { %2034 = vmatprep.mubr.msk.bf16.mxu1 %vm2541_vm0, %v2540_v0 }
 0x87a   : > { %v1213_v3 = vpop.f32.mrb[24].mxu1 }
 0x87b   : > { %v2030_v4 = vpop.f32.mrb[25].mxu1  ;;  %v1220_v6 = vsel %vm851_vm2, %v1213_v3, -inf }
 0x87c   : > { %1221 = vmax.xlane.f32.xlu1 %v1220_v6  ;;  %v1216_v7 = vpop.f32.mrb[26].mxu1 }
 0x87d   : > { %v2031_v8 = vpop.f32.mrb[27].mxu1  ;;  %v1223_v9 = vsel %vm851_vm2, %v1216_v7, -inf }
 0x87e   : > { %1224 = vmax.xlane.f32.xlu0 %v1223_v9  ;;  %v2247_v8 = vld [vmem:[#allocation11 + $0x38] sm:$0xff]   ;;  %v1826_v9 = vld [vmem:[%s3120_s18] ss:$0 sm:$0xff] }
 0x882   : > { %1405 = vmax.xlane.f32.xlu0 %v1404_v10  ;;  %v798_v10 = vadd.f32 %v1826_v9, %v2891_v16 }
 0x886   : > { %1408 = vmax.xlane.f32.xlu0 %v1407_v11  ;;  %v799_v11 = vadd.f32 %v1826_v9, %v2894_v17 }
 0x909   : > { %v1222_v12 = vpop.xlane.xlu1 %1221 }
 0x90a   : > { %v1226_v13 = vsub.f32 %v1213_v3, %v1222_v12 }
 0x90b   : > { %v1225_v14 = vpop.xlane.xlu0 %1224 }
 0x90c   : > { %v1228_v15 = vmul.f32 1.442695, %v1226_v13  ;;  %v1227_v18 = vsub.f32 %v1216_v7, %v1225_v14  ;;  %v2246_v7 = vld [vmem:[#allocation11 + $0x30] sm:$0xff]  }
 0x90e   : > { %2264 = vpow2.f32 %v1228_v15  ;;  %v1230_v19 = vmul.f32 1.442695, %v1227_v18 }
 0x90f   : > { %v1406_v20 = vpop.xlane.xlu0 %1405 }
 0x910   : > { %2266 = vpow2.f32 %v1230_v19  ;;  %v1410_v21 = vsub.f32 %v1397_v62, %v1406_v20 }
 0x912   : > { %v1412_v22 = vmul.f32 1.442695, %v1410_v21 }
 0x913   : > { %v1409_v23 = vpop.xlane.xlu0 %1408 }
 0x914   : > { %2268 = vpow2.f32 %v1412_v22  ;;  %v1411_v24 = vsub.f32 %v1400_v1, %v1409_v23 }
 0x916   : > { %v1414_v25 = vmul.f32 1.442695, %v1411_v24 }
 0x918   : > { %v2265_v26 = vpop.eup %2264  ;;  %2270 = vpow2.f32 %v1414_v25 }
 0x919   : > { %v1232_v27 = vsel %vm851_vm2, %v2265_v26, 0.0 }
 0x91a   : > { %v2267_v28 = vpop.eup %2266  ;;  %1233 = vadd.xlane.f32.xlu1 %v1232_v27 }
 0x91b   : > { %v1235_v29 = vsel %vm851_vm2, %v2267_v28, 0.0 }
 0x91c   : > { %1236 = vadd.xlane.f32.xlu0 %v1235_v29 }
 0x91e   : > { %v2269_v30 = vpop.eup %2268 }
 0x91f   : > { %v1416_v31 = vsel %vm851_vm2, %v2269_v30, 0.0 }
 0x920   : > { %1417 = vadd.xlane.f32.xlu1 %v1416_v31 }
 0x922   : > { %v2271_v33 = vpop.eup %2270 }
 0x923   : > { %v1419_v34 = vsel %vm851_vm2, %v2271_v33, 0.0 }
 0x924   : > { %1420 = vadd.xlane.f32.xlu0 %v1419_v34 }
 0x931   : > { %1243 = vrot.lane.b32.xlu1 %v2945_v5, %s2543_s30  ;;  %s2545_s30 = smov [#allocation13]  }
 0x93a   : > { %1427 = vrot.lane.b32.xlu0 %v2945_v5, %s2544_s1  ;;  %s2454_s1 = sshll.u32 %s2545_s30, 4  ;;  %s2455_s1 = int_to_ptr.vmem [resolvable:$false] %s2454_s1 }
 0x93b   : > { %s2456_s12 = scalar_lea.vmem %s2455_s1, 512  ;;  %p2457_p13 = scmp.lt.s32.totalorder %s3037_s28, %s2455_s1 }
 0x93c   : > { %p2458_p0 = scmp.lt.s32.totalorder %s2456_s12, %s2450_s19 }
 0x93e   : > { %p2459_p2 = por %p2458_p0, %p2457_p13 }
 0x940   : > { %p2460_p8 = pnand %p2459_p2, %p2453_p1 }
 0x9a7   : > { %v1234_v36 = vpop.xlane.xlu1 %1233 }
 0x9a8   : > { %2272 = vrcp.f32 %v1234_v36 }
 0x9a9   : > { %v1237_v37 = vpop.xlane.xlu0 %1236 }
 0x9aa   : > { %2274 = vrcp.f32 %v1237_v37 }
 0x9ad   : > { %v1418_v38 = vpop.xlane.xlu1 %1417 }
 0x9ae   : > { %2276 = vrcp.f32 %v1418_v38 }
 0x9b1   : > { %v1244_v39 = vpop.permute.xlu1 %1243  ;;  %v1421_v40 = vpop.xlane.xlu0 %1420 }
 0x9b2   : > { %v2273_v41 = vpop.eup %2272  ;;  %2278 = vrcp.f32 %v1421_v40  ;;  %2033 = vmatpush3.bf16.msra.mxu1 %v1244_v39 }
 0x9b3   : > { %2038 = vmatprep.subr.bf16.mxu1 %v2540_v0  ;;  %v1240_v43 = vmul.f32 %v2273_v41, %v2265_v26 }
 0x9b4   : > { %v2275_v42 = vpop.eup %2274 }
 0x9b5   : > { %v1241_v44 = vmul.f32 %v2275_v42, %v2267_v28  ;;  %v1428_v45 = vpop.permute.xlu0 %1427 }
 0x9b6   : > { %2053 = vmatpush3.bf16.msra.mxu0 %v1428_v45 }
 0x9b7   : > { %v1242_v5 = vpack.c.bf16 %v1241_v44, %v1240_v43  ;;  %2066 = vmatprep.subr.bf16.mxu0 %v2540_v0 }
 0x9b8   : > { %v2277_v47 = vpop.eup %2276 }
 0x9b9   : > { %2035 = vmatmul.mubr.msk.bf16.vlgmr.msra.gmra.mrb[28].mxu1 %vm851_vm2, %v1242_v5  ;;  %v1424_v49 = vmul.f32 %v2277_v47, %v2269_v30 }
 0x9ba   : > { %2039 = vmatpush3.bf16.msra.mxu1 %v2236_v46  ;;  %2042 = vmatprep.mubr.msk.bf16.mxu1 %vm2541_vm0, %v2540_v0 }
 0x9bb   : > { %2040 = vmatprep.subr.bf16.mxu1 %v2540_v0 }
 0x9bc   : > { %v2279_v48 = vpop.eup %2278 }
 0x9bd   : > { %v1425_v50 = vmul.f32 %v2279_v48, %v2271_v33 }
 0x9be   : > { %2041 = vmatpush3.bf16.msra.mxu1 %v2237_v52 }
 0x9bf   : > { %v1426_v51 = vpack.c.bf16 %v1425_v50, %v1424_v49  ;;  %2058 = vmatprep.subr.bf16.mxu1 %v2540_v0 }
 0x9c1   : > { %2055 = vmatmul.mubr.msk.bf16.vlgmr.msra.gmra.mrb[12].mxu0 %vm851_vm2, %v1426_v51 }
 0x9c2   : > { %2082 = vmatprep.mubr.msk.bf16.mxu0 %vm2541_vm0, %v2540_v0  ;;  %2067 = vmatpush3.bf16.msra.mxu0 %v2240_v35 }
 0x9c3   : > { %2068 = vmatprep.subr.bf16.mxu0 %v2540_v0 }
 0x9c6   : > { %2069 = vmatpush3.bf16.msra.mxu0 %v2241_v53 }
 0x9c7   : > { %2070 = vmatprep.subr.bf16.mxu0 %v2540_v0 }
 0x9ca   : > { %2071 = vmatpush3.bf16.msra.mxu0 %v2242_v32 }
 0x9cb   : > { %2072 = vmatprep.subr.bf16.mxu0 %v2540_v0 }
 0x9ce   : > { %2073 = vmatpush3.bf16.msra.mxu0 %v2243_v54 }
 0x9cf   : > { %2074 = vmatprep.subr.bf16.mxu0 %v2540_v0 }
 0x9d2   : > { %2075 = vmatpush3.bf16.msra.mxu0 %v2244_v55 }
 0x9d3   : > { %2076 = vmatprep.subr.bf16.mxu0 %v2540_v0 }
 0x9d6   : > { %2077 = vmatpush3.bf16.msra.mxu0 %v2245_v56 }
 0x9d7   : > { %2078 = vmatprep.subr.bf16.mxu0 %v2540_v0 }
 0x9da   : > { %2079 = vmatpush3.bf16.msra.mxu0 %v2246_v7 }
 0x9db   : > { %2080 = vmatprep.subr.bf16.mxu0 %v2540_v0 }
 0x9de   : > { %2081 = vmatpush3.bf16.msra.mxu0 %v2247_v8 }
 0xa8c   : > { %v1283_v57 = vpop.f32.mrb[28].mxu1 }
 0xa8d   : > { %v2036_v58 = vpop.f32.mrb[29].mxu1 }
 0xa8e   : > { %v1286_v59 = vpop.f32.mrb[30].mxu1 }
 0xa8f   : > { %v1290_v61 = vpack.c.bf16 %v1286_v59, %v1283_v57  ;;  %v2037_v62 = vpop.f32.mrb[31].mxu1 }
 0xa91   : > { %2043 = vmatmul.mubr.msk.bf16.vlgmr.msra.gmra.mrb[12].mxu1 %vm803_vm1, %v1290_v61 }
 0xa92   : > { %2059 = vmatpush3.bf16.msra.mxu1 %v2238_v60  ;;  %2062 = vmatprep.mubr.msk.bf16.mxu1 %vm2541_vm0, %v2540_v0 }
 0xa93   : > { %2060 = vmatprep.subr.bf16.mxu1 %v2540_v0 }
 0xa94   : > { %v1467_v1 = vpop.f32.mrb[12].mxu0 }
 0xa95   : > { %v2056_v2 = vpop.f32.mrb[13].mxu0 }
 0xa96   : > { %v1470_v3 = vpop.f32.mrb[14].mxu0  ;;  %2061 = vmatpush3.bf16.msra.mxu1 %v2239_v63 }
 0xa97   : > { %v1474_v4 = vpack.c.bf16 %v1470_v3, %v1467_v1  ;;  %v2057_v6 = vpop.f32.mrb[15].mxu0 }
 0xa9d   : > { %2063 = vmatmul.mubr.msk.bf16.vlgmr.msra.gmra.mrb[12].mxu1 %vm803_vm1, %v1474_v4 }
 0xb70   : > { %v1528_v12 = vpop.f32.mrb[12].mxu1 }
 0xb71   : > { %v2064_v13 = vpop.f32.mrb[13].mxu1  ;;  %v2086_v15 = vadd.f32 %v1528_v12, %v798_v10 }
 0xb72   : > { %v1531_v14 = vpop.f32.mrb[14].mxu1 }
 0xb73   : > { %v2087_v18 = vadd.f32 %v1531_v14, %v799_v11  ;;  %v2065_v19 = vpop.f32.mrb[15].mxu1 }
 0xb75   : > { %v1537_v20 = vpack.c.bf16 %v2087_v18, %v2086_v15 }
 0xb77   : > { %2083 = vmatmul.mubr.bf16.vlgmr.msra.gmra.mrb[16].mxu0 %v1537_v20 }
 0xc4a   : > { %v1636_v0 = vpop.f32.mrb[16].mxu0 }
 0xc4b   : > { %v1637_v21 = vadd.f32 %v2086_v15, %v1636_v0  ;;  %v2084_v16 = vpop.f32.mrb[17].mxu0 }
 0xc4c   : > { %v1639_v17 = vpop.f32.mrb[18].mxu0 }
 0xc4d   : > { %1643 = vst [vmem:[%s450_s20] sm:$0xff] %v1637_v21  ;;  %v1640_v22 = vadd.f32 %v2087_v18, %v1639_v17  ;;  %v2085_v23 = vpop.f32.mrb[19].mxu0 }
 0xc4f   : > { %1644 = vst [vmem:[%s450_s20 + $0x8] sm:$0xff] %v1640_v22 }
 0xc50   : > { %2463 = shalt.err (!%p2460_p8)
}
 0xc51   : > { %s2464_s26 = scalar_lea.hbm %s3042_s9, 256  ;;  %s2468_s22 = scalar_lea.hbm %s3121_s23, 512 }
 0xc52   : > { %p2465_p6 = scmp.ne.s32.totalorder %s3042_s9, %s2464_s26  ;;  %p2469_p3 = scmp.lt.u32.totalorder %s3042_s9, %s3121_s23 }
 0xc53   : > { %p2470_p5 = scmp.lt.u32.totalorder %s2468_s22, %s2464_s26  ;;  %p2472_p7 = scmp.lt.u32.totalorder %s2464_s26, %s3042_s9 }
 0xc54   : > { %p2466_p10 = pnand %p2465_p6, %p3122_p4 }
 0xc55   : > { %p2471_p9 = por %p2470_p5, %p2469_p3 }
 0xc56   : > { %p2467_p11 = pneg %p2466_p10 }
 0xc57   : > { %p2473_p12 = por %p2472_p7, %p2471_p9 }
 0xc59   : > { %p2474_p1 = pnand %p2473_p12, %p2467_p11 }
 0xc5b   : > { %2477 = shalt.err (!%p2474_p1)
}
 0xc5c   : > { %s2546_s19 = smov 128   ;;  %s2547_s30 = smov 8  }
 0xc5d   : > { %2122 = dma.vmem_to_hbm [thread:$0]  (%p3122_p4), %s3037_s28, 256, %s3042_s9, %s1646_s21, %s2546_s19, %s2546_s19, %s2547_s30  }
 0xc5e PF: > { %s1674_s1 = sand.u32 1, %s2516_s13   ;;  %p3123_p13 = scmp.ne.s32.totalorder %s3111_s29, 0 }
 0xc5f   : > { %p3124_p0 = scmp.ge.s32.totalorder %s2528_s16, 2  ;;  %s1675_s12 = scalar_lea.sflag [#allocation4], %s1674_s1 }
 0xc61   : > { %p2145_p2 = pnand %p3124_p0, %p3123_p13 }
 0xc63   : > { %2511 = dma.done.wait (!%p2145_p2), %s1675_s12, 256  }
 0xc64   : > { %2513 = vsyncadd (!%p2145_p2), %s1675_s12, 4294967040  ;;  %p26_p8 = scmp.ge.s32.totalorder %s2776_s11, 4   ;;  %s3125_s13 = smov %s2520_s14 }
 0xc65   : > { %s3126_s14 = smov %s2524_s15  ;;  %s3127_s15 = smov %s2788_s10 }
 0xc66   : > { %s3128_s16 = smov %s2776_s11  ;;  %28 = sbr.rel (!%p26_p8) target bundleno = 12 (0xc), region = 125 }
 0xc6d   :  { %1680 = vsyncpa [#allocation3], 1 }
 0xc6e   :  { %1682 = vsyncpa [#allocation3 + $0x1], 1 }
 0xc6f   :  { %1683 = vsyncpa [#allocation6], 1 }
 0xc70   :  { %1684 = vsyncpa [#allocation9], 1 }
 0xc71   :  { %1685 = vsyncpa [#allocation12], 1 }
 0xc72   :  { %1686 = vsyncpa [#allocation4], 1 }
 0xc73   :  { %1688 = vsyncpa [#allocation4 + $0x1], 1 }

</bundles_post_ra>
